<compile_context>
chip_gen: v7x
topology: tpu7x:2x2x1
jax: 0.10.0
libtpu: 0.0.40
codegen_flags: <defaults>
</compile_context>

<pallas_src>
import functools

import jax
import jax.numpy as jnp
from jax import lax
from jax.experimental import pallas as pl
from jax.experimental.pallas import tpu as pltpu

EPS = 1e-6  # LayerNorm eps from the Annotated Transformer


def _layernorm(v, a, b, d):
    # matches:  a * (x - mean) / (std + eps) + b   with torch.std (unbiased, /(d-1))
    mean = jnp.mean(v, axis=-1, keepdims=True)
    var = jnp.sum((v - mean) ** 2, axis=-1, keepdims=True) * (1.0 / (d - 1))
    inv = pl.reciprocal(jnp.sqrt(var) + EPS, approx=True)   # EUP, frees VPU divide
    return a * ((v - mean) * inv) + b


# ----------------------------------------------------------------------------- kernel
def encoder_kernel(x_ref, mask_ref,
                   a1_ref, b1_ref, wqkv_ref, bqkv_ref, wo_ref, bo_ref,
                   a2_ref, b2_ref, w1_ref, b1f_ref, w2_ref, b2f_ref,
                   fa_ref, fb_ref,
                   o_ref,
                   x_scr, mask_scr,
                   *, n_heads, d_model, n_layers, block_b, seq_len):
    # NOTE: correctness of the resident x_scr / mask_scr carry REQUIRES the
    # layer axis to be the innermost grid axis and marked "arbitrary".
    layer = pl.program_id(1)
    d_k = d_model // n_heads
    cdt = wqkv_ref.dtype            # matmul-operand dtype (bf16 or f32)
    rows = block_b * seq_len

    # Load activation + build additive mask once per batch block (layer 0 only).
    @pl.when(layer == 0)
    def _():
        x_scr[...] = x_ref[...].astype(jnp.float32).reshape(rows, d_model)
        mask_scr[...] = jnp.where(mask_ref[...] == 0.0,
                                  jnp.float32(-1e9), jnp.float32(0.0))

    x = x_scr[...]                  # (Bt*S, D) f32, carried across layers

    # ---- sublayer 0: x + self_attn(norm(x), mask) ----------------------------
    ln1 = _layernorm(x, a1_ref[0], b1_ref[0], d_model)
    # Fused QKV projection on the whole batch block; 1/sqrt(d_k) already folded
    # into the Q columns of wqkv / bqkv at stacking time.
    qkv = jnp.dot(ln1.astype(cdt), wqkv_ref[0],
                  preferred_element_type=jnp.float32) + bqkv_ref[0]     # (Bt*S, 3D)

    wo = wo_ref[0]                  # (D, D)
    attn_blocks = []
    for b in range(block_b):                 # static unrolled (small Bt)
        r0, r1 = b * seq_len, (b + 1) * seq_len
        madd = mask_scr[b]                   # (1, S) additive mask for this element
        acc_b = jnp.zeros((seq_len, d_model), jnp.float32)
        for h in range(n_heads):             # static lane slices, no transposes
            c0 = h * d_k
            qh = qkv[r0:r1, c0:c0 + d_k].astype(cdt)
            kh = qkv[r0:r1, d_model + c0:d_model + c0 + d_k].astype(cdt)
            vh = qkv[r0:r1, 2 * d_model + c0:2 * d_model + c0 + d_k].astype(cdt)
            # scores = qh @ kh.T  (contraction over d_k, no explicit transpose)
            s = lax.dot_general(qh, kh, (((1,), (1,)), ((), ())),
                                preferred_element_type=jnp.float32)      # (S, S)
            s = s + madd
            m = jnp.max(s, axis=-1, keepdims=True)
            p = jnp.exp(s - m)
            denom = jnp.sum(p, axis=-1, keepdims=True)                   # (S, 1)
            ctx = jnp.dot(p.astype(cdt), vh,
                          preferred_element_type=jnp.float32)            # (S, d_k)
            # normalize AFTER the PV matmul (S*d_k mults instead of S*S)
            ctx = ctx * pl.reciprocal(denom, approx=True)
            # per-head output projection accumulation: ctx_h @ Wo[h*d_k:(h+1)*d_k]
            acc_b = acc_b + jnp.dot(ctx.astype(cdt), wo[c0:c0 + d_k, :],
                                    preferred_element_type=jnp.float32)
        attn_blocks.append(acc_b)
    attn = jnp.concatenate(attn_blocks, axis=0)                          # (Bt*S, D)
    x = x + attn + bo_ref[0]        # TODO(synk): nn.Dropout skipped (eval mode -> identity)

    # ---- sublayer 1: x + feed_forward(norm(x)) --------------------------------
    ln2 = _layernorm(x, a2_ref[0], b2_ref[0], d_model)
    hid = jnp.maximum(
        jnp.dot(ln2.astype(cdt), w1_ref[0],
                preferred_element_type=jnp.float32) + b1f_ref[0],
        0.0).astype(cdt)                                                 # keep (Bt*S, d_ff) in cdt
    ff = jnp.dot(hid, w2_ref[0], preferred_element_type=jnp.float32) + b2f_ref[0]
    x = x + ff

    x_scr[...] = x                  # carry to next layer

    # Final LayerNorm fused into the same kernel; single HBM writeback per batch block.
    @pl.when(layer == n_layers - 1)
    def _():
        o_ref[...] = _layernorm(x, fa_ref[...], fb_ref[...], d_model) \
            .reshape(block_b, seq_len, d_model).astype(o_ref.dtype)


# ----------------------------------------------------------------------------- wrapper
def _pick_vmem_limit_bytes():
    """Generation-aware scoped-VMEM budget."""
    try:
        kind = jax.devices()[0].device_kind.lower()
    except Exception:
        kind = ""
    if "v7" in kind or "7x" in kind:
        return 48 * 1024 * 1024      # v7x: 64 MiB physical VMEM -> stay lean
    if "v6" in kind or "v5" in kind:
        return 100 * 1024 * 1024     # v5e/v6e: 128 MiB physical VMEM
    return 32 * 1024 * 1024          # conservative default for unknown hardware


def stack_encoder_params(layers, final_a, final_b, *, n_heads,
                         compute_dtype=jnp.bfloat16):
    """Stack per-layer params along a leading layer axis; fuse Wq|Wk|Wv into one
    matmul and fold the 1/sqrt(d_k) attention scale into the Q projection."""
    cd = compute_dtype
    d_model = layers[0]["wq"].shape[0]
    scale = float(d_model // n_heads) ** -0.5

    def stk(name):
        return jnp.stack([lp[name] for lp in layers], axis=0)

    wqkv = jnp.stack([jnp.concatenate([lp["wq"] * scale, lp["wk"], lp["wv"]], axis=-1)
                      for lp in layers], axis=0)
    bqkv = jnp.stack([jnp.concatenate([lp["bq"] * scale, lp["bk"], lp["bv"]], axis=-1)
                      for lp in layers], axis=0)
    return dict(
        a1=stk("a1"), b1=stk("b1"),
        wqkv=wqkv.astype(cd), bqkv=bqkv,
        wo=stk("wo").astype(cd), bo=stk("bo"),
        a2=stk("a2"), b2=stk("b2"),
        w1=stk("w1").astype(cd), b1f=stk("b1f"),
        w2=stk("w2").astype(cd), b2f=stk("b2f"),
        fa=final_a, fb=final_b,
    )


def encoder_forward(x, mask, stacked, *, n_heads, block_b=None):
    """Single fused pallas_call over all layers + final LayerNorm.

    grid = (B // block_b, n_layers): block_b batch elements are processed per
    grid step so the per-layer weight stream is amortized over block_b elements.
    """
    B, S, D = x.shape
    n_layers = stacked["a1"].shape[0]
    d_ff = stacked["w1"].shape[-1]

    if block_b is None:
        block_b = min(B, 4)          # 4-8 is a good default at production sizes
    while B % block_b != 0:          # need an exact batch blocking
        block_b -= 1

    def lspec(shape):
        # Per-layer-stacked param: blocked along the (innermost) layer grid axis.
        n = len(shape)
        return pl.BlockSpec((1,) + shape, lambda bb, l, _n=n: (l,) + (0,) * _n)

    in_specs = [
        pl.BlockSpec((block_b, S, D), lambda bb, l: (bb, 0, 0)),   # x
        pl.BlockSpec((block_b, 1, S), lambda bb, l: (bb, 0, 0)),   # mask
        lspec((1, D)), lspec((1, D)),                              # a1, b1
        lspec((D, 3 * D)), lspec((1, 3 * D)),                      # wqkv, bqkv (fused, Q pre-scaled)
        lspec((D, D)), lspec((1, D)),                              # wo, bo
        lspec((1, D)), lspec((1, D)),                              # a2, b2
        lspec((D, d_ff)), lspec((1, d_ff)),                        # w1, b1f
        lspec((d_ff, D)), lspec((1, D)),                           # w2, b2f
        pl.BlockSpec((1, D), lambda bb, l: (0, 0)),                # final norm a
        pl.BlockSpec((1, D), lambda bb, l: (0, 0)),                # final norm b
    ]
    args = [x, mask,
            stacked["a1"], stacked["b1"], stacked["wqkv"], stacked["bqkv"],
            stacked["wo"], stacked["bo"], stacked["a2"], stacked["b2"],
            stacked["w1"], stacked["b1f"], stacked["w2"], stacked["b2f"],
            stacked["fa"], stacked["fb"]]

    kernel = functools.partial(encoder_kernel, n_heads=n_heads, d_model=D,
                               n_layers=n_layers, block_b=block_b, seq_len=S)

    return pl.pallas_call(
        kernel,
        out_shape=jax.ShapeDtypeStruct((B, S, D), x.dtype),
        grid=(B // block_b, n_layers),
        in_specs=in_specs,
        out_specs=pl.BlockSpec((block_b, S, D), lambda bb, l: (bb, 0, 0)),
        scratch_shapes=[pltpu.VMEM((block_b * S, D), jnp.float32),  # resident activation carry
                        pltpu.VMEM((block_b, 1, S), jnp.float32)],  # additive mask cache
        compiler_params=pltpu.CompilerParams(
            # layer axis MUST stay innermost + "arbitrary" (scratch carry depends on it)
            dimension_semantics=("parallel", "arbitrary"),
            vmem_limit_bytes=_pick_vmem_limit_bytes()),
    )(*args)


# ----------------------------------------------------------------------------- reference
def ref_encoder(x, mask, layers, final_a, final_b, *, n_heads):
    hp = jax.lax.Precision.HIGHEST

    def ln(v, a, b):
        mean = v.mean(-1, keepdims=True)
        var = ((v - mean) ** 2).sum(-1, keepdims=True) / (v.shape[-1] - 1)
        return a * (v - mean) / (jnp.sqrt(var) + EPS) + b

    B, S, D = x.shape
    dk = D // n_heads
    for p in layers:
        l1 = ln(x, p["a1"], p["b1"])
        q = jnp.matmul(l1, p["wq"], precision=hp) + p["bq"]
        k = jnp.matmul(l1, p["wk"], precision=hp) + p["bk"]
        v = jnp.matmul(l1, p["wv"], precision=hp) + p["bv"]
        qh = q.reshape(B, S, n_heads, dk).transpose(0, 2, 1, 3)
        kh = k.reshape(B, S, n_heads, dk).transpose(0, 2, 1, 3)
        vh = v.reshape(B, S, n_heads, dk).transpose(0, 2, 1, 3)
        scores = jnp.einsum("bhqd,bhkd->bhqk", qh, kh, precision=hp) / jnp.sqrt(dk)
        scores = jnp.where(mask[:, None, :, :] == 0.0, -1e9, scores)
        attn = jax.nn.softmax(scores, axis=-1)
        out = jnp.einsum("bhqk,bhkd->bhqd", attn, vh, precision=hp)
        out = out.transpose(0, 2, 1, 3).reshape(B, S, D)
        x = x + jnp.matmul(out, p["wo"], precision=hp) + p["bo"]
        l2 = ln(x, p["a2"], p["b2"])
        hid = jnp.maximum(jnp.matmul(l2, p["w1"], precision=hp) + p["b1f"], 0.0)
        x = x + jnp.matmul(hid, p["w2"], precision=hp) + p["b2f"]
    return ln(x, final_a, final_b)


# ----------------------------------------------------------------------------- main
def init_layer_params(key, d_model, d_ff):
    ks = jax.random.split(key, 12)
    f32 = jnp.float32
    return {
        "a1": jnp.ones((1, d_model), f32), "b1": jnp.zeros((1, d_model), f32),
        "wq": 0.1 * jax.random.normal(ks[0], (d_model, d_model), f32),
        "bq": 0.01 * jax.random.normal(ks[1], (1, d_model), f32),
        "wk": 0.1 * jax.random.normal(ks[2], (d_model, d_model), f32),
        "bk": 0.01 * jax.random.normal(ks[3], (1, d_model), f32),
        "wv": 0.1 * jax.random.normal(ks[4], (d_model, d_model), f32),
        "bv": 0.01 * jax.random.normal(ks[5], (1, d_model), f32),
        "wo": 0.1 * jax.random.normal(ks[6], (d_model, d_model), f32),
        "bo": 0.01 * jax.random.normal(ks[7], (1, d_model), f32),
        "a2": jnp.ones((1, d_model), f32), "b2": jnp.zeros((1, d_model), f32),
        "w1": 0.1 * jax.random.normal(ks[8], (d_model, d_ff), f32),
        "b1f": 0.01 * jax.random.normal(ks[9], (1, d_ff), f32),
        "w2": 0.1 * jax.random.normal(ks[10], (d_ff, d_model), f32),
        "b2f": 0.01 * jax.random.normal(ks[11], (1, d_model), f32),
    }


if __name__ == "__main__":
    B, S, D, H, DFF, N_LAYERS = 2, 8, 32, 4, 64, 2

    key = jax.random.PRNGKey(0)
    k_x, k_layers, k_fin = jax.random.split(key, 3)

    x = jax.random.normal(k_x, (B, S, D), jnp.float32)
    mask = jnp.ones((B, 1, S), jnp.float32)
    mask = mask.at[1, 0, S - 2:].set(0.0)          # mask out last two positions of batch 1

    layer_keys = jax.random.split(k_layers, N_LAYERS)
    layers = [init_layer_params(k, D, DFF) for k in layer_keys]
    final_a = jnp.ones((1, D), jnp.float32)
    final_b = jnp.zeros((1, D), jnp.float32)

    ref = jax.block_until_ready(
        ref_encoder(x, mask, layers, final_a, final_b, n_heads=H))

    # (1) f32 matmul-operand path: tight check against pure-JAX reference.
    params_f32 = stack_encoder_params(layers, final_a, final_b, n_heads=H,
                                      compute_dtype=jnp.float32)
    out_f32 = jax.block_until_ready(encoder_forward(x, mask, params_f32, n_heads=H))
    assert out_f32.shape == (B, S, D)
    err_f32 = float(jnp.max(jnp.abs(out_f32 - ref)))
    assert err_f32 < 2e-2, f"f32 path mismatch vs. reference: {err_f32}"

    # (2) bf16 matmul-operand path (default; f32 accumulation): looser tolerance
    #     for the bf16 quantization of MXU operands.
    params_bf16 = stack_encoder_params(layers, final_a, final_b, n_heads=H,
                                       compute_dtype=jnp.bfloat16)
    out_bf16 = jax.block_until_ready(encoder_forward(x, mask, params_bf16, n_heads=H))
    err_bf16 = float(jnp.max(jnp.abs(out_bf16 - ref)))
    assert err_bf16 < 1e-1, f"bf16 path mismatch vs. reference: {err_bf16}"

    print("KERNEL_OK")
</pallas_src>

<mosaic_0001>
module attributes {stable_mosaic.version = 11 : i64} {
  func.func @encoder_kernel(%arg0: i32, %arg1: i32, %arg2: memref<2x8x32xf32, #tpu.memory_space<vmem>>, %arg3: memref<2x1x8xf32, #tpu.memory_space<vmem>>, %arg4: memref<1x1x32xf32, #tpu.memory_space<vmem>>, %arg5: memref<1x1x32xf32, #tpu.memory_space<vmem>>, %arg6: memref<1x32x96xf32, #tpu.memory_space<vmem>>, %arg7: memref<1x1x96xf32, #tpu.memory_space<vmem>>, %arg8: memref<1x32x32xf32, #tpu.memory_space<vmem>>, %arg9: memref<1x1x32xf32, #tpu.memory_space<vmem>>, %arg10: memref<1x1x32xf32, #tpu.memory_space<vmem>>, %arg11: memref<1x1x32xf32, #tpu.memory_space<vmem>>, %arg12: memref<1x32x64xf32, #tpu.memory_space<vmem>>, %arg13: memref<1x1x64xf32, #tpu.memory_space<vmem>>, %arg14: memref<1x64x32xf32, #tpu.memory_space<vmem>>, %arg15: memref<1x1x32xf32, #tpu.memory_space<vmem>>, %arg16: memref<1x32xf32, #tpu.memory_space<vmem>>, %arg17: memref<1x32xf32, #tpu.memory_space<vmem>>, %arg18: memref<2x8x32xf32, #tpu.memory_space<vmem>>, %arg19: memref<16x32xf32, #tpu.memory_space<vmem>>, %arg20: memref<2x1x8xf32, #tpu.memory_space<vmem>>) attributes {dimension_semantics = [#tpu.dimension_semantics<parallel>, #tpu.dimension_semantics<arbitrary>], iteration_bounds = array<i64: 1, 2>, scalar_prefetch = 0 : i64, scratch_operands = 2 : i64, tpu.core_type = #tpu.core_type<tc>, window_params = [{transform_indices = @transform_0, window_bounds = array<i64: 2, 8, 32>}, {transform_indices = @transform_1, window_bounds = array<i64: 2, 1, 8>}, {transform_indices = @transform_2, window_bounds = array<i64: 1, 1, 32>}, {transform_indices = @transform_3, window_bounds = array<i64: 1, 1, 32>}, {transform_indices = @transform_4, window_bounds = array<i64: 1, 32, 96>}, {transform_indices = @transform_5, window_bounds = array<i64: 1, 1, 96>}, {transform_indices = @transform_6, window_bounds = array<i64: 1, 32, 32>}, {transform_indices = @transform_7, window_bounds = array<i64: 1, 1, 32>}, {transform_indices = @transform_8, window_bounds = array<i64: 1, 1, 32>}, {transform_indices = @transform_9, window_bounds = array<i64: 1, 1, 32>}, {transform_indices = @transform_10, window_bounds = array<i64: 1, 32, 64>}, {transform_indices = @transform_11, window_bounds = array<i64: 1, 1, 64>}, {transform_indices = @transform_12, window_bounds = array<i64: 1, 64, 32>}, {transform_indices = @transform_13, window_bounds = array<i64: 1, 1, 32>}, {pipeline_mode = #tpu.pipeline_mode<synchronous>, transform_indices = @transform_14, window_bounds = array<i64: 1, 32>}, {pipeline_mode = #tpu.pipeline_mode<synchronous>, transform_indices = @transform_15, window_bounds = array<i64: 1, 32>}, {transform_indices = @transform_16, window_bounds = array<i64: 2, 8, 32>}]} {
    %c0_i32 = arith.constant 0 : i32
    %0 = arith.cmpi eq, %arg1, %c0_i32 : i32
    %1 = arith.extui %0 : i1 to i32
    %c0_i32_0 = arith.constant 0 : i32
    %2 = arith.cmpi ne, %1, %c0_i32_0 : i32
    scf.if %2 {
      %c0_101 = arith.constant 0 : index
      %c0_102 = arith.constant 0 : index
      %c0_103 = arith.constant 0 : index
      %260 = vector.load %arg2[%c0_101, %c0_102, %c0_103] : memref<2x8x32xf32, #tpu.memory_space<vmem>>, vector<2x8x32xf32>
      %261 = vector.shape_cast %260 : vector<2x8x32xf32> to vector<16x32xf32>
      %c0_104 = arith.constant 0 : index
      %c0_105 = arith.constant 0 : index
      %262 = vector.load %arg19[%c0_104, %c0_105] : memref<16x32xf32, #tpu.memory_space<vmem>>, vector<16x32xf32>
      tpu.vector_store %arg19[%c0_104, %c0_105], %261 {strides = array<i32>} : memref<16x32xf32, #tpu.memory_space<vmem>>, vector<16x32xf32>,
      %c0_106 = arith.constant 0 : index
      %c0_107 = arith.constant 0 : index
      %c0_108 = arith.constant 0 : index
      %263 = vector.load %arg3[%c0_106, %c0_107, %c0_108] : memref<2x1x8xf32, #tpu.memory_space<vmem>>, vector<2x1x8xf32>
      %cst_109 = arith.constant 0.000000e+00 : f32
      %264 = vector.broadcast %cst_109 : f32 to vector<2x1x8xf32>
      %265 = arith.cmpf oeq, %263, %264 : vector<2x1x8xf32>
      %cst_110 = arith.constant -1.000000e+09 : f32
      %cst_111 = arith.constant 0.000000e+00 : f32
      %266 = vector.broadcast %cst_110 : f32 to vector<2x1x8xf32>
      %267 = vector.broadcast %cst_111 : f32 to vector<2x1x8xf32>
      %268 = arith.select %265, %266, %267 : vector<2x1x8xi1>, vector<2x1x8xf32>
      %c0_112 = arith.constant 0 : index
      %c0_113 = arith.constant 0 : index
      %c0_114 = arith.constant 0 : index
      %269 = vector.load %arg20[%c0_112, %c0_113, %c0_114] : memref<2x1x8xf32, #tpu.memory_space<vmem>>, vector<2x1x8xf32>
      tpu.vector_store %arg20[%c0_112, %c0_113, %c0_114], %268 {strides = array<i32>} : memref<2x1x8xf32, #tpu.memory_space<vmem>>, vector<2x1x8xf32>,
    } else {
    }
    %c0 = arith.constant 0 : index
    %c0_1 = arith.constant 0 : index
    %3 = vector.load %arg19[%c0, %c0_1] : memref<16x32xf32, #tpu.memory_space<vmem>>, vector<16x32xf32>
    %c0_2 = arith.constant 0 : index
    %c0_3 = arith.constant 0 : index
    %c0_4 = arith.constant 0 : index
    %4 = vector.load %arg4[%c0_2, %c0_3, %c0_4] : memref<1x1x32xf32, #tpu.memory_space<vmem>>, vector<1x1x32xf32>
    %5 = vector.shape_cast %4 : vector<1x1x32xf32> to vector<1x32xf32>
    %c0_5 = arith.constant 0 : index
    %c0_6 = arith.constant 0 : index
    %c0_7 = arith.constant 0 : index
    %6 = vector.load %arg5[%c0_5, %c0_6, %c0_7] : memref<1x1x32xf32, #tpu.memory_space<vmem>>, vector<1x1x32xf32>
    %7 = vector.shape_cast %6 : vector<1x1x32xf32> to vector<1x32xf32>
    %cst = arith.constant dense<0.000000e+00> : vector<16xf32>
    %8 = vector.multi_reduction <add>, %3, %cst [1] : vector<16x32xf32> to vector<16xf32>
    %9 = vector.shape_cast %8 : vector<16xf32> to vector<16x1xf32>
    %cst_8 = arith.constant 3.200000e+01 : f32
    %10 = vector.broadcast %cst_8 : f32 to vector<16x1xf32>
    %11 = arith.divf %9, %10 : vector<16x1xf32>
    %12 = vector.broadcast %11 : vector<16x1xf32> to vector<16x32xf32>
    %13 = arith.subf %3, %12 : vector<16x32xf32>
    %14 = arith.mulf %13, %13 : vector<16x32xf32>
    %cst_9 = arith.constant dense<0.000000e+00> : vector<16xf32>
    %15 = vector.multi_reduction <add>, %14, %cst_9 [1] : vector<16x32xf32> to vector<16xf32>
    %16 = vector.shape_cast %15 : vector<16xf32> to vector<16x1xf32>
    %cst_10 = arith.constant 0.0322580636 : f32
    %17 = vector.broadcast %cst_10 : f32 to vector<16x1xf32>
    %18 = arith.mulf %16, %17 : vector<16x1xf32>
    %19 = math.sqrt %18 : vector<16x1xf32>
    %cst_11 = arith.constant 9.99999997E-7 : f32
    %20 = vector.broadcast %cst_11 : f32 to vector<16x1xf32>
    %21 = arith.addf %19, %20 : vector<16x1xf32>
    %22 = tpu.reciprocal %21 {approx = true} : vector<16x1xf32> -> vector<16x1xf32>
    %23 = vector.broadcast %11 : vector<16x1xf32> to vector<16x32xf32>
    %24 = arith.subf %3, %23 : vector<16x32xf32>
    %25 = vector.broadcast %22 : vector<16x1xf32> to vector<16x32xf32>
    %26 = arith.mulf %24, %25 : vector<16x32xf32>
    %27 = vector.broadcast %5 : vector<1x32xf32> to vector<16x32xf32>
    %28 = arith.mulf %27, %26 : vector<16x32xf32>
    %29 = vector.broadcast %7 : vector<1x32xf32> to vector<16x32xf32>
    %30 = arith.addf %28, %29 : vector<16x32xf32>
    %c0_12 = arith.constant 0 : index
    %c0_13 = arith.constant 0 : index
    %c0_14 = arith.constant 0 : index
    %31 = vector.load %arg6[%c0_12, %c0_13, %c0_14] : memref<1x32x96xf32, #tpu.memory_space<vmem>>, vector<1x32x96xf32>
    %32 = vector.shape_cast %31 : vector<1x32x96xf32> to vector<32x96xf32>
    %cst_15 = arith.constant dense<0.000000e+00> : vector<16x96xf32>
    %33 = tpu.matmul %30, %32, %cst_15 {dimension_numbers = #tpu.dot_dimension_numbers<[1], [0], [0], [1], [0, 0, 1, 1], [], []>} : vector<16x32xf32>, vector<32x96xf32>, vector<16x96xf32> -> vector<16x96xf32>
    %c0_16 = arith.constant 0 : index
    %c0_17 = arith.constant 0 : index
    %c0_18 = arith.constant 0 : index
    %34 = vector.load %arg7[%c0_16, %c0_17, %c0_18] : memref<1x1x96xf32, #tpu.memory_space<vmem>>, vector<1x1x96xf32>
    %35 = vector.shape_cast %34 : vector<1x1x96xf32> to vector<1x96xf32>
    %36 = vector.broadcast %35 : vector<1x96xf32> to vector<16x96xf32>
    %37 = arith.addf %33, %36 : vector<16x96xf32>
    %c0_19 = arith.constant 0 : index
    %c0_20 = arith.constant 0 : index
    %c0_21 = arith.constant 0 : index
    %38 = vector.load %arg8[%c0_19, %c0_20, %c0_21] : memref<1x32x32xf32, #tpu.memory_space<vmem>>, vector<1x32x32xf32>
    %39 = vector.shape_cast %38 : vector<1x32x32xf32> to vector<32x32xf32>
    %c0_22 = arith.constant 0 : index
    %c0_23 = arith.constant 0 : index
    %c0_24 = arith.constant 0 : index
    %40 = vector.load %arg20[%c0_22, %c0_23, %c0_24] : memref<2x1x8xf32, #tpu.memory_space<vmem>>, vector<1x1x8xf32>
    %41 = vector.shape_cast %40 : vector<1x1x8xf32> to vector<1x8xf32>
    %cst_25 = arith.constant 0.000000e+00 : f32
    %42 = vector.broadcast %cst_25 : f32 to vector<8x32xf32>
    %43 = vector.extract_strided_slice %37 {offsets = [0, 0], sizes = [8, 8], strides = [1, 1]} : vector<16x96xf32> to vector<8x8xf32>
    %44 = vector.extract_strided_slice %37 {offsets = [0, 32], sizes = [8, 8], strides = [1, 1]} : vector<16x96xf32> to vector<8x8xf32>
    %45 = vector.extract_strided_slice %37 {offsets = [0, 64], sizes = [8, 8], strides = [1, 1]} : vector<16x96xf32> to vector<8x8xf32>
    %cst_26 = arith.constant dense<0.000000e+00> : vector<8x8xf32>
    %46 = tpu.matmul %43, %44, %cst_26 {dimension_numbers = #tpu.dot_dimension_numbers<[1], [1], [0], [0], [0, 0, 1, 0], [], []>} : vector<8x8xf32>, vector<8x8xf32>, vector<8x8xf32> -> vector<8x8xf32>
    %47 = vector.broadcast %41 : vector<1x8xf32> to vector<8x8xf32>
    %48 = arith.addf %46, %47 : vector<8x8xf32>
    %cst_27 = arith.constant dense<0xFF800000> : vector<8xf32>
    %49 = vector.multi_reduction <maximumf>, %48, %cst_27 [1] : vector<8x8xf32> to vector<8xf32>
    %50 = vector.shape_cast %49 : vector<8xf32> to vector<8x1xf32>
    %51 = vector.broadcast %50 : vector<8x1xf32> to vector<8x8xf32>
    %52 = arith.subf %48, %51 : vector<8x8xf32>
    %53 = math.exp %52 : vector<8x8xf32>
    %cst_28 = arith.constant dense<0.000000e+00> : vector<8xf32>
    %54 = vector.multi_reduction <add>, %53, %cst_28 [1] : vector<8x8xf32> to vector<8xf32>
    %55 = vector.shape_cast %54 : vector<8xf32> to vector<8x1xf32>
    %cst_29 = arith.constant dense<0.000000e+00> : vector<8x8xf32>
    %56 = tpu.matmul %53, %45, %cst_29 {dimension_numbers = #tpu.dot_dimension_numbers<[1], [0], [0], [1], [0, 0, 1, 1], [], []>} : vector<8x8xf32>, vector<8x8xf32>, vector<8x8xf32> -> vector<8x8xf32>
    %57 = tpu.reciprocal %55 {approx = true} : vector<8x1xf32> -> vector<8x1xf32>
    %58 = vector.broadcast %57 : vector<8x1xf32> to vector<8x8xf32>
    %59 = arith.mulf %56, %58 : vector<8x8xf32>
    %60 = vector.extract_strided_slice %39 {offsets = [0, 0], sizes = [8, 32], strides = [1, 1]} : vector<32x32xf32> to vector<8x32xf32>
    %cst_30 = arith.constant dense<0.000000e+00> : vector<8x32xf32>
    %61 = tpu.matmul %59, %60, %cst_30 {dimension_numbers = #tpu.dot_dimension_numbers<[1], [0], [0], [1], [0, 0, 1, 1], [], []>} : vector<8x8xf32>, vector<8x32xf32>, vector<8x32xf32> -> vector<8x32xf32>
    %62 = arith.addf %42, %61 : vector<8x32xf32>
    %63 = vector.extract_strided_slice %37 {offsets = [0, 8], sizes = [8, 8], strides = [1, 1]} : vector<16x96xf32> to vector<8x8xf32>
    %64 = vector.extract_strided_slice %37 {offsets = [0, 40], sizes = [8, 8], strides = [1, 1]} : vector<16x96xf32> to vector<8x8xf32>
    %65 = vector.extract_strided_slice %37 {offsets = [0, 72], sizes = [8, 8], strides = [1, 1]} : vector<16x96xf32> to vector<8x8xf32>
    %cst_31 = arith.constant dense<0.000000e+00> : vector<8x8xf32>
    %66 = tpu.matmul %63, %64, %cst_31 {dimension_numbers = #tpu.dot_dimension_numbers<[1], [1], [0], [0], [0, 0, 1, 0], [], []>} : vector<8x8xf32>, vector<8x8xf32>, vector<8x8xf32> -> vector<8x8xf32>
    %67 = vector.broadcast %41 : vector<1x8xf32> to vector<8x8xf32>
    %68 = arith.addf %66, %67 : vector<8x8xf32>
    %cst_32 = arith.constant dense<0xFF800000> : vector<8xf32>
    %69 = vector.multi_reduction <maximumf>, %68, %cst_32 [1] : vector<8x8xf32> to vector<8xf32>
    %70 = vector.shape_cast %69 : vector<8xf32> to vector<8x1xf32>
    %71 = vector.broadcast %70 : vector<8x1xf32> to vector<8x8xf32>
    %72 = arith.subf %68, %71 : vector<8x8xf32>
    %73 = math.exp %72 : vector<8x8xf32>
    %cst_33 = arith.constant dense<0.000000e+00> : vector<8xf32>
    %74 = vector.multi_reduction <add>, %73, %cst_33 [1] : vector<8x8xf32> to vector<8xf32>
    %75 = vector.shape_cast %74 : vector<8xf32> to vector<8x1xf32>
    %cst_34 = arith.constant dense<0.000000e+00> : vector<8x8xf32>
    %76 = tpu.matmul %73, %65, %cst_34 {dimension_numbers = #tpu.dot_dimension_numbers<[1], [0], [0], [1], [0, 0, 1, 1], [], []>} : vector<8x8xf32>, vector<8x8xf32>, vector<8x8xf32> -> vector<8x8xf32>
    %77 = tpu.reciprocal %75 {approx = true} : vector<8x1xf32> -> vector<8x1xf32>
    %78 = vector.broadcast %77 : vector<8x1xf32> to vector<8x8xf32>
    %79 = arith.mulf %76, %78 : vector<8x8xf32>
    %80 = vector.extract_strided_slice %39 {offsets = [8, 0], sizes = [8, 32], strides = [1, 1]} : vector<32x32xf32> to vector<8x32xf32>
    %cst_35 = arith.constant dense<0.000000e+00> : vector<8x32xf32>
    %81 = tpu.matmul %79, %80, %cst_35 {dimension_numbers = #tpu.dot_dimension_numbers<[1], [0], [0], [1], [0, 0, 1, 1], [], []>} : vector<8x8xf32>, vector<8x32xf32>, vector<8x32xf32> -> vector<8x32xf32>
    %82 = arith.addf %62, %81 : vector<8x32xf32>
    %83 = vector.extract_strided_slice %37 {offsets = [0, 16], sizes = [8, 8], strides = [1, 1]} : vector<16x96xf32> to vector<8x8xf32>
    %84 = vector.extract_strided_slice %37 {offsets = [0, 48], sizes = [8, 8], strides = [1, 1]} : vector<16x96xf32> to vector<8x8xf32>
    %85 = vector.extract_strided_slice %37 {offsets = [0, 80], sizes = [8, 8], strides = [1, 1]} : vector<16x96xf32> to vector<8x8xf32>
    %cst_36 = arith.constant dense<0.000000e+00> : vector<8x8xf32>
    %86 = tpu.matmul %83, %84, %cst_36 {dimension_numbers = #tpu.dot_dimension_numbers<[1], [1], [0], [0], [0, 0, 1, 0], [], []>} : vector<8x8xf32>, vector<8x8xf32>, vector<8x8xf32> -> vector<8x8xf32>
    %87 = vector.broadcast %41 : vector<1x8xf32> to vector<8x8xf32>
    %88 = arith.addf %86, %87 : vector<8x8xf32>
    %cst_37 = arith.constant dense<0xFF800000> : vector<8xf32>
    %89 = vector.multi_reduction <maximumf>, %88, %cst_37 [1] : vector<8x8xf32> to vector<8xf32>
    %90 = vector.shape_cast %89 : vector<8xf32> to vector<8x1xf32>
    %91 = vector.broadcast %90 : vector<8x1xf32> to vector<8x8xf32>
    %92 = arith.subf %88, %91 : vector<8x8xf32>
    %93 = math.exp %92 : vector<8x8xf32>
    %cst_38 = arith.constant dense<0.000000e+00> : vector<8xf32>
    %94 = vector.multi_reduction <add>, %93, %cst_38 [1] : vector<8x8xf32> to vector<8xf32>
    %95 = vector.shape_cast %94 : vector<8xf32> to vector<8x1xf32>
    %cst_39 = arith.constant dense<0.000000e+00> : vector<8x8xf32>
    %96 = tpu.matmul %93, %85, %cst_39 {dimension_numbers = #tpu.dot_dimension_numbers<[1], [0], [0], [1], [0, 0, 1, 1], [], []>} : vector<8x8xf32>, vector<8x8xf32>, vector<8x8xf32> -> vector<8x8xf32>
    %97 = tpu.reciprocal %95 {approx = true} : vector<8x1xf32> -> vector<8x1xf32>
    %98 = vector.broadcast %97 : vector<8x1xf32> to vector<8x8xf32>
    %99 = arith.mulf %96, %98 : vector<8x8xf32>
    %100 = vector.extract_strided_slice %39 {offsets = [16, 0], sizes = [8, 32], strides = [1, 1]} : vector<32x32xf32> to vector<8x32xf32>
    %cst_40 = arith.constant dense<0.000000e+00> : vector<8x32xf32>
    %101 = tpu.matmul %99, %100, %cst_40 {dimension_numbers = #tpu.dot_dimension_numbers<[1], [0], [0], [1], [0, 0, 1, 1], [], []>} : vector<8x8xf32>, vector<8x32xf32>, vector<8x32xf32> -> vector<8x32xf32>
    %102 = arith.addf %82, %101 : vector<8x32xf32>
    %103 = vector.extract_strided_slice %37 {offsets = [0, 24], sizes = [8, 8], strides = [1, 1]} : vector<16x96xf32> to vector<8x8xf32>
    %104 = vector.extract_strided_slice %37 {offsets = [0, 56], sizes = [8, 8], strides = [1, 1]} : vector<16x96xf32> to vector<8x8xf32>
    %105 = vector.extract_strided_slice %37 {offsets = [0, 88], sizes = [8, 8], strides = [1, 1]} : vector<16x96xf32> to vector<8x8xf32>
    %cst_41 = arith.constant dense<0.000000e+00> : vector<8x8xf32>
    %106 = tpu.matmul %103, %104, %cst_41 {dimension_numbers = #tpu.dot_dimension_numbers<[1], [1], [0], [0], [0, 0, 1, 0], [], []>} : vector<8x8xf32>, vector<8x8xf32>, vector<8x8xf32> -> vector<8x8xf32>
    %107 = vector.broadcast %41 : vector<1x8xf32> to vector<8x8xf32>
    %108 = arith.addf %106, %107 : vector<8x8xf32>
    %cst_42 = arith.constant dense<0xFF800000> : vector<8xf32>
    %109 = vector.multi_reduction <maximumf>, %108, %cst_42 [1] : vector<8x8xf32> to vector<8xf32>
    %110 = vector.shape_cast %109 : vector<8xf32> to vector<8x1xf32>
    %111 = vector.broadcast %110 : vector<8x1xf32> to vector<8x8xf32>
    %112 = arith.subf %108, %111 : vector<8x8xf32>
    %113 = math.exp %112 : vector<8x8xf32>
    %cst_43 = arith.constant dense<0.000000e+00> : vector<8xf32>
    %114 = vector.multi_reduction <add>, %113, %cst_43 [1] : vector<8x8xf32> to vector<8xf32>
    %115 = vector.shape_cast %114 : vector<8xf32> to vector<8x1xf32>
    %cst_44 = arith.constant dense<0.000000e+00> : vector<8x8xf32>
    %116 = tpu.matmul %113, %105, %cst_44 {dimension_numbers = #tpu.dot_dimension_numbers<[1], [0], [0], [1], [0, 0, 1, 1], [], []>} : vector<8x8xf32>, vector<8x8xf32>, vector<8x8xf32> -> vector<8x8xf32>
    %117 = tpu.reciprocal %115 {approx = true} : vector<8x1xf32> -> vector<8x1xf32>
    %118 = vector.broadcast %117 : vector<8x1xf32> to vector<8x8xf32>
    %119 = arith.mulf %116, %118 : vector<8x8xf32>
    %120 = vector.extract_strided_slice %39 {offsets = [24, 0], sizes = [8, 32], strides = [1, 1]} : vector<32x32xf32> to vector<8x32xf32>
    %cst_45 = arith.constant dense<0.000000e+00> : vector<8x32xf32>
    %121 = tpu.matmul %119, %120, %cst_45 {dimension_numbers = #tpu.dot_dimension_numbers<[1], [0], [0], [1], [0, 0, 1, 1], [], []>} : vector<8x8xf32>, vector<8x32xf32>, vector<8x32xf32> -> vector<8x32xf32>
    %122 = arith.addf %102, %121 : vector<8x32xf32>
    %c1 = arith.constant 1 : index
    %c0_46 = arith.constant 0 : index
    %c0_47 = arith.constant 0 : index
    %123 = vector.load %arg20[%c1, %c0_46, %c0_47] : memref<2x1x8xf32, #tpu.memory_space<vmem>>, vector<1x1x8xf32>
    %124 = vector.shape_cast %123 : vector<1x1x8xf32> to vector<1x8xf32>
    %cst_48 = arith.constant 0.000000e+00 : f32
    %125 = vector.broadcast %cst_48 : f32 to vector<8x32xf32>
    %126 = vector.extract_strided_slice %37 {offsets = [8, 0], sizes = [8, 8], strides = [1, 1]} : vector<16x96xf32> to vector<8x8xf32>
    %127 = vector.extract_strided_slice %37 {offsets = [8, 32], sizes = [8, 8], strides = [1, 1]} : vector<16x96xf32> to vector<8x8xf32>
    %128 = vector.extract_strided_slice %37 {offsets = [8, 64], sizes = [8, 8], strides = [1, 1]} : vector<16x96xf32> to vector<8x8xf32>
    %cst_49 = arith.constant dense<0.000000e+00> : vector<8x8xf32>
    %129 = tpu.matmul %126, %127, %cst_49 {dimension_numbers = #tpu.dot_dimension_numbers<[1], [1], [0], [0], [0, 0, 1, 0], [], []>} : vector<8x8xf32>, vector<8x8xf32>, vector<8x8xf32> -> vector<8x8xf32>
    %130 = vector.broadcast %124 : vector<1x8xf32> to vector<8x8xf32>
    %131 = arith.addf %129, %130 : vector<8x8xf32>
    %cst_50 = arith.constant dense<0xFF800000> : vector<8xf32>
    %132 = vector.multi_reduction <maximumf>, %131, %cst_50 [1] : vector<8x8xf32> to vector<8xf32>
    %133 = vector.shape_cast %132 : vector<8xf32> to vector<8x1xf32>
    %134 = vector.broadcast %133 : vector<8x1xf32> to vector<8x8xf32>
    %135 = arith.subf %131, %134 : vector<8x8xf32>
    %136 = math.exp %135 : vector<8x8xf32>
    %cst_51 = arith.constant dense<0.000000e+00> : vector<8xf32>
    %137 = vector.multi_reduction <add>, %136, %cst_51 [1] : vector<8x8xf32> to vector<8xf32>
    %138 = vector.shape_cast %137 : vector<8xf32> to vector<8x1xf32>
    %cst_52 = arith.constant dense<0.000000e+00> : vector<8x8xf32>
    %139 = tpu.matmul %136, %128, %cst_52 {dimension_numbers = #tpu.dot_dimension_numbers<[1], [0], [0], [1], [0, 0, 1, 1], [], []>} : vector<8x8xf32>, vector<8x8xf32>, vector<8x8xf32> -> vector<8x8xf32>
    %140 = tpu.reciprocal %138 {approx = true} : vector<8x1xf32> -> vector<8x1xf32>
    %141 = vector.broadcast %140 : vector<8x1xf32> to vector<8x8xf32>
    %142 = arith.mulf %139, %141 : vector<8x8xf32>
    %143 = vector.extract_strided_slice %39 {offsets = [0, 0], sizes = [8, 32], strides = [1, 1]} : vector<32x32xf32> to vector<8x32xf32>
    %cst_53 = arith.constant dense<0.000000e+00> : vector<8x32xf32>
    %144 = tpu.matmul %142, %143, %cst_53 {dimension_numbers = #tpu.dot_dimension_numbers<[1], [0], [0], [1], [0, 0, 1, 1], [], []>} : vector<8x8xf32>, vector<8x32xf32>, vector<8x32xf32> -> vector<8x32xf32>
    %145 = arith.addf %125, %144 : vector<8x32xf32>
    %146 = vector.extract_strided_slice %37 {offsets = [8, 8], sizes = [8, 8], strides = [1, 1]} : vector<16x96xf32> to vector<8x8xf32>
    %147 = vector.extract_strided_slice %37 {offsets = [8, 40], sizes = [8, 8], strides = [1, 1]} : vector<16x96xf32> to vector<8x8xf32>
    %148 = vector.extract_strided_slice %37 {offsets = [8, 72], sizes = [8, 8], strides = [1, 1]} : vector<16x96xf32> to vector<8x8xf32>
    %cst_54 = arith.constant dense<0.000000e+00> : vector<8x8xf32>
    %149 = tpu.matmul %146, %147, %cst_54 {dimension_numbers = #tpu.dot_dimension_numbers<[1], [1], [0], [0], [0, 0, 1, 0], [], []>} : vector<8x8xf32>, vector<8x8xf32>, vector<8x8xf32> -> vector<8x8xf32>
    %150 = vector.broadcast %124 : vector<1x8xf32> to vector<8x8xf32>
    %151 = arith.addf %149, %150 : vector<8x8xf32>
    %cst_55 = arith.constant dense<0xFF800000> : vector<8xf32>
    %152 = vector.multi_reduction <maximumf>, %151, %cst_55 [1] : vector<8x8xf32> to vector<8xf32>
    %153 = vector.shape_cast %152 : vector<8xf32> to vector<8x1xf32>
    %154 = vector.broadcast %153 : vector<8x1xf32> to vector<8x8xf32>
    %155 = arith.subf %151, %154 : vector<8x8xf32>
    %156 = math.exp %155 : vector<8x8xf32>
    %cst_56 = arith.constant dense<0.000000e+00> : vector<8xf32>
    %157 = vector.multi_reduction <add>, %156, %cst_56 [1] : vector<8x8xf32> to vector<8xf32>
    %158 = vector.shape_cast %157 : vector<8xf32> to vector<8x1xf32>
    %cst_57 = arith.constant dense<0.000000e+00> : vector<8x8xf32>
    %159 = tpu.matmul %156, %148, %cst_57 {dimension_numbers = #tpu.dot_dimension_numbers<[1], [0], [0], [1], [0, 0, 1, 1], [], []>} : vector<8x8xf32>, vector<8x8xf32>, vector<8x8xf32> -> vector<8x8xf32>
    %160 = tpu.reciprocal %158 {approx = true} : vector<8x1xf32> -> vector<8x1xf32>
    %161 = vector.broadcast %160 : vector<8x1xf32> to vector<8x8xf32>
    %162 = arith.mulf %159, %161 : vector<8x8xf32>
    %163 = vector.extract_strided_slice %39 {offsets = [8, 0], sizes = [8, 32], strides = [1, 1]} : vector<32x32xf32> to vector<8x32xf32>
    %cst_58 = arith.constant dense<0.000000e+00> : vector<8x32xf32>
    %164 = tpu.matmul %162, %163, %cst_58 {dimension_numbers = #tpu.dot_dimension_numbers<[1], [0], [0], [1], [0, 0, 1, 1], [], []>} : vector<8x8xf32>, vector<8x32xf32>, vector<8x32xf32> -> vector<8x32xf32>
    %165 = arith.addf %145, %164 : vector<8x32xf32>
    %166 = vector.extract_strided_slice %37 {offsets = [8, 16], sizes = [8, 8], strides = [1, 1]} : vector<16x96xf32> to vector<8x8xf32>
    %167 = vector.extract_strided_slice %37 {offsets = [8, 48], sizes = [8, 8], strides = [1, 1]} : vector<16x96xf32> to vector<8x8xf32>
    %168 = vector.extract_strided_slice %37 {offsets = [8, 80], sizes = [8, 8], strides = [1, 1]} : vector<16x96xf32> to vector<8x8xf32>
    %cst_59 = arith.constant dense<0.000000e+00> : vector<8x8xf32>
    %169 = tpu.matmul %166, %167, %cst_59 {dimension_numbers = #tpu.dot_dimension_numbers<[1], [1], [0], [0], [0, 0, 1, 0], [], []>} : vector<8x8xf32>, vector<8x8xf32>, vector<8x8xf32> -> vector<8x8xf32>
    %170 = vector.broadcast %124 : vector<1x8xf32> to vector<8x8xf32>
    %171 = arith.addf %169, %170 : vector<8x8xf32>
    %cst_60 = arith.constant dense<0xFF800000> : vector<8xf32>
    %172 = vector.multi_reduction <maximumf>, %171, %cst_60 [1] : vector<8x8xf32> to vector<8xf32>
    %173 = vector.shape_cast %172 : vector<8xf32> to vector<8x1xf32>
    %174 = vector.broadcast %173 : vector<8x1xf32> to vector<8x8xf32>
    %175 = arith.subf %171, %174 : vector<8x8xf32>
    %176 = math.exp %175 : vector<8x8xf32>
    %cst_61 = arith.constant dense<0.000000e+00> : vector<8xf32>
    %177 = vector.multi_reduction <add>, %176, %cst_61 [1] : vector<8x8xf32> to vector<8xf32>
    %178 = vector.shape_cast %177 : vector<8xf32> to vector<8x1xf32>
    %cst_62 = arith.constant dense<0.000000e+00> : vector<8x8xf32>
    %179 = tpu.matmul %176, %168, %cst_62 {dimension_numbers = #tpu.dot_dimension_numbers<[1], [0], [0], [1], [0, 0, 1, 1], [], []>} : vector<8x8xf32>, vector<8x8xf32>, vector<8x8xf32> -> vector<8x8xf32>
    %180 = tpu.reciprocal %178 {approx = true} : vector<8x1xf32> -> vector<8x1xf32>
    %181 = vector.broadcast %180 : vector<8x1xf32> to vector<8x8xf32>
    %182 = arith.mulf %179, %181 : vector<8x8xf32>
    %183 = vector.extract_strided_slice %39 {offsets = [16, 0], sizes = [8, 32], strides = [1, 1]} : vector<32x32xf32> to vector<8x32xf32>
    %cst_63 = arith.constant dense<0.000000e+00> : vector<8x32xf32>
    %184 = tpu.matmul %182, %183, %cst_63 {dimension_numbers = #tpu.dot_dimension_numbers<[1], [0], [0], [1], [0, 0, 1, 1], [], []>} : vector<8x8xf32>, vector<8x32xf32>, vector<8x32xf32> -> vector<8x32xf32>
    %185 = arith.addf %165, %184 : vector<8x32xf32>
    %186 = vector.extract_strided_slice %37 {offsets = [8, 24], sizes = [8, 8], strides = [1, 1]} : vector<16x96xf32> to vector<8x8xf32>
    %187 = vector.extract_strided_slice %37 {offsets = [8, 56], sizes = [8, 8], strides = [1, 1]} : vector<16x96xf32> to vector<8x8xf32>
    %188 = vector.extract_strided_slice %37 {offsets = [8, 88], sizes = [8, 8], strides = [1, 1]} : vector<16x96xf32> to vector<8x8xf32>
    %cst_64 = arith.constant dense<0.000000e+00> : vector<8x8xf32>
    %189 = tpu.matmul %186, %187, %cst_64 {dimension_numbers = #tpu.dot_dimension_numbers<[1], [1], [0], [0], [0, 0, 1, 0], [], []>} : vector<8x8xf32>, vector<8x8xf32>, vector<8x8xf32> -> vector<8x8xf32>
    %190 = vector.broadcast %124 : vector<1x8xf32> to vector<8x8xf32>
    %191 = arith.addf %189, %190 : vector<8x8xf32>
    %cst_65 = arith.constant dense<0xFF800000> : vector<8xf32>
    %192 = vector.multi_reduction <maximumf>, %191, %cst_65 [1] : vector<8x8xf32> to vector<8xf32>
    %193 = vector.shape_cast %192 : vector<8xf32> to vector<8x1xf32>
    %194 = vector.broadcast %193 : vector<8x1xf32> to vector<8x8xf32>
    %195 = arith.subf %191, %194 : vector<8x8xf32>
    %196 = math.exp %195 : vector<8x8xf32>
    %cst_66 = arith.constant dense<0.000000e+00> : vector<8xf32>
    %197 = vector.multi_reduction <add>, %196, %cst_66 [1] : vector<8x8xf32> to vector<8xf32>
    %198 = vector.shape_cast %197 : vector<8xf32> to vector<8x1xf32>
    %cst_67 = arith.constant dense<0.000000e+00> : vector<8x8xf32>
    %199 = tpu.matmul %196, %188, %cst_67 {dimension_numbers = #tpu.dot_dimension_numbers<[1], [0], [0], [1], [0, 0, 1, 1], [], []>} : vector<8x8xf32>, vector<8x8xf32>, vector<8x8xf32> -> vector<8x8xf32>
    %200 = tpu.reciprocal %198 {approx = true} : vector<8x1xf32> -> vector<8x1xf32>
    %201 = vector.broadcast %200 : vector<8x1xf32> to vector<8x8xf32>
    %202 = arith.mulf %199, %201 : vector<8x8xf32>
    %203 = vector.extract_strided_slice %39 {offsets = [24, 0], sizes = [8, 32], strides = [1, 1]} : vector<32x32xf32> to vector<8x32xf32>
    %cst_68 = arith.constant dense<0.000000e+00> : vector<8x32xf32>
    %204 = tpu.matmul %202, %203, %cst_68 {dimension_numbers = #tpu.dot_dimension_numbers<[1], [0], [0], [1], [0, 0, 1, 1], [], []>} : vector<8x8xf32>, vector<8x32xf32>, vector<8x32xf32> -> vector<8x32xf32>
    %205 = arith.addf %185, %204 : vector<8x32xf32>
    %206 = tpu.concatenate %122, %205 in 0 : vector<8x32xf32>, vector<8x32xf32> -> vector<16x32xf32>
    %207 = arith.addf %3, %206 : vector<16x32xf32>
    %c0_69 = arith.constant 0 : index
    %c0_70 = arith.constant 0 : index
    %c0_71 = arith.constant 0 : index
    %208 = vector.load %arg9[%c0_69, %c0_70, %c0_71] : memref<1x1x32xf32, #tpu.memory_space<vmem>>, vector<1x1x32xf32>
    %209 = vector.shape_cast %208 : vector<1x1x32xf32> to vector<1x32xf32>
    %210 = vector.broadcast %209 : vector<1x32xf32> to vector<16x32xf32>
    %211 = arith.addf %207, %210 : vector<16x32xf32>
    %c0_72 = arith.constant 0 : index
    %c0_73 = arith.constant 0 : index
    %c0_74 = arith.constant 0 : index
    %212 = vector.load %arg10[%c0_72, %c0_73, %c0_74] : memref<1x1x32xf32, #tpu.memory_space<vmem>>, vector<1x1x32xf32>
    %213 = vector.shape_cast %212 : vector<1x1x32xf32> to vector<1x32xf32>
    %c0_75 = arith.constant 0 : index
    %c0_76 = arith.constant 0 : index
    %c0_77 = arith.constant 0 : index
    %214 = vector.load %arg11[%c0_75, %c0_76, %c0_77] : memref<1x1x32xf32, #tpu.memory_space<vmem>>, vector<1x1x32xf32>
    %215 = vector.shape_cast %214 : vector<1x1x32xf32> to vector<1x32xf32>
    %cst_78 = arith.constant dense<0.000000e+00> : vector<16xf32>
    %216 = vector.multi_reduction <add>, %211, %cst_78 [1] : vector<16x32xf32> to vector<16xf32>
    %217 = vector.shape_cast %216 : vector<16xf32> to vector<16x1xf32>
    %cst_79 = arith.constant 3.200000e+01 : f32
    %218 = vector.broadcast %cst_79 : f32 to vector<16x1xf32>
    %219 = arith.divf %217, %218 : vector<16x1xf32>
    %220 = vector.broadcast %219 : vector<16x1xf32> to vector<16x32xf32>
    %221 = arith.subf %211, %220 : vector<16x32xf32>
    %222 = arith.mulf %221, %221 : vector<16x32xf32>
    %cst_80 = arith.constant dense<0.000000e+00> : vector<16xf32>
    %223 = vector.multi_reduction <add>, %222, %cst_80 [1] : vector<16x32xf32> to vector<16xf32>
    %224 = vector.shape_cast %223 : vector<16xf32> to vector<16x1xf32>
    %cst_81 = arith.constant 0.0322580636 : f32
    %225 = vector.broadcast %cst_81 : f32 to vector<16x1xf32>
    %226 = arith.mulf %224, %225 : vector<16x1xf32>
    %227 = math.sqrt %226 : vector<16x1xf32>
    %cst_82 = arith.constant 9.99999997E-7 : f32
    %228 = vector.broadcast %cst_82 : f32 to vector<16x1xf32>
    %229 = arith.addf %227, %228 : vector<16x1xf32>
    %230 = tpu.reciprocal %229 {approx = true} : vector<16x1xf32> -> vector<16x1xf32>
    %231 = vector.broadcast %219 : vector<16x1xf32> to vector<16x32xf32>
    %232 = arith.subf %211, %231 : vector<16x32xf32>
    %233 = vector.broadcast %230 : vector<16x1xf32> to vector<16x32xf32>
    %234 = arith.mulf %232, %233 : vector<16x32xf32>
    %235 = vector.broadcast %213 : vector<1x32xf32> to vector<16x32xf32>
    %236 = arith.mulf %235, %234 : vector<16x32xf32>
    %237 = vector.broadcast %215 : vector<1x32xf32> to vector<16x32xf32>
    %238 = arith.addf %236, %237 : vector<16x32xf32>
    %c0_83 = arith.constant 0 : index
    %c0_84 = arith.constant 0 : index
    %c0_85 = arith.constant 0 : index
    %239 = vector.load %arg12[%c0_83, %c0_84, %c0_85] : memref<1x32x64xf32, #tpu.memory_space<vmem>>, vector<1x32x64xf32>
    %240 = vector.shape_cast %239 : vector<1x32x64xf32> to vector<32x64xf32>
    %cst_86 = arith.constant dense<0.000000e+00> : vector<16x64xf32>
    %241 = tpu.matmul %238, %240, %cst_86 {dimension_numbers = #tpu.dot_dimension_numbers<[1], [0], [0], [1], [0, 0, 1, 1], [], []>} : vector<16x32xf32>, vector<32x64xf32>, vector<16x64xf32> -> vector<16x64xf32>
    %c0_87 = arith.constant 0 : index
    %c0_88 = arith.constant 0 : index
    %c0_89 = arith.constant 0 : index
    %242 = vector.load %arg13[%c0_87, %c0_88, %c0_89] : memref<1x1x64xf32, #tpu.memory_space<vmem>>, vector<1x1x64xf32>
    %243 = vector.shape_cast %242 : vector<1x1x64xf32> to vector<1x64xf32>
    %244 = vector.broadcast %243 : vector<1x64xf32> to vector<16x64xf32>
    %245 = arith.addf %241, %244 : vector<16x64xf32>
    %cst_90 = arith.constant 0.000000e+00 : f32
    %246 = vector.broadcast %cst_90 : f32 to vector<16x64xf32>
    %247 = arith.maximumf %245, %246 : vector<16x64xf32>
    %c0_91 = arith.constant 0 : index
    %c0_92 = arith.constant 0 : index
    %c0_93 = arith.constant 0 : index
    %248 = vector.load %arg14[%c0_91, %c0_92, %c0_93] : memref<1x64x32xf32, #tpu.memory_space<vmem>>, vector<1x64x32xf32>
    %249 = vector.shape_cast %248 : vector<1x64x32xf32> to vector<64x32xf32>
    %cst_94 = arith.constant dense<0.000000e+00> : vector<16x32xf32>
    %250 = tpu.matmul %247, %249, %cst_94 {dimension_numbers = #tpu.dot_dimension_numbers<[1], [0], [0], [1], [0, 0, 1, 1], [], []>} : vector<16x64xf32>, vector<64x32xf32>, vector<16x32xf32> -> vector<16x32xf32>
    %c0_95 = arith.constant 0 : index
    %c0_96 = arith.constant 0 : index
    %c0_97 = arith.constant 0 : index
    %251 = vector.load %arg15[%c0_95, %c0_96, %c0_97] : memref<1x1x32xf32, #tpu.memory_space<vmem>>, vector<1x1x32xf32>
    %252 = vector.shape_cast %251 : vector<1x1x32xf32> to vector<1x32xf32>
    %253 = vector.broadcast %252 : vector<1x32xf32> to vector<16x32xf32>
    %254 = arith.addf %250, %253 : vector<16x32xf32>
    %255 = arith.addf %211, %254 : vector<16x32xf32>
    %c0_98 = arith.constant 0 : index
    %c0_99 = arith.constant 0 : index
    %256 = vector.load %arg19[%c0_98, %c0_99] : memref<16x32xf32, #tpu.memory_space<vmem>>, vector<16x32xf32>
    tpu.vector_store %arg19[%c0_98, %c0_99], %255 {strides = array<i32>} : memref<16x32xf32, #tpu.memory_space<vmem>>, vector<16x32xf32>,
    %c1_i32 = arith.constant 1 : i32
    %257 = arith.cmpi eq, %arg1, %c1_i32 : i32
    %258 = arith.extui %257 : i1 to i32
    %c0_i32_100 = arith.constant 0 : i32
    %259 = arith.cmpi ne, %258, %c0_i32_100 : i32
    scf.if %259 {
      %c0_101 = arith.constant 0 : index
      %c0_102 = arith.constant 0 : index
      %260 = vector.load %arg16[%c0_101, %c0_102] : memref<1x32xf32, #tpu.memory_space<vmem>>, vector<1x32xf32>
      %c0_103 = arith.constant 0 : index
      %c0_104 = arith.constant 0 : index
      %261 = vector.load %arg17[%c0_103, %c0_104] : memref<1x32xf32, #tpu.memory_space<vmem>>, vector<1x32xf32>
      %cst_105 = arith.constant dense<0.000000e+00> : vector<16xf32>
      %262 = vector.multi_reduction <add>, %255, %cst_105 [1] : vector<16x32xf32> to vector<16xf32>
      %263 = vector.shape_cast %262 : vector<16xf32> to vector<16x1xf32>
      %cst_106 = arith.constant 3.200000e+01 : f32
      %264 = vector.broadcast %cst_106 : f32 to vector<16x1xf32>
      %265 = arith.divf %263, %264 : vector<16x1xf32>
      %266 = vector.broadcast %265 : vector<16x1xf32> to vector<16x32xf32>
      %267 = arith.subf %255, %266 : vector<16x32xf32>
      %268 = arith.mulf %267, %267 : vector<16x32xf32>
      %cst_107 = arith.constant dense<0.000000e+00> : vector<16xf32>
      %269 = vector.multi_reduction <add>, %268, %cst_107 [1] : vector<16x32xf32> to vector<16xf32>
      %270 = vector.shape_cast %269 : vector<16xf32> to vector<16x1xf32>
      %cst_108 = arith.constant 0.0322580636 : f32
      %271 = vector.broadcast %cst_108 : f32 to vector<16x1xf32>
      %272 = arith.mulf %270, %271 : vector<16x1xf32>
      %273 = math.sqrt %272 : vector<16x1xf32>
      %cst_109 = arith.constant 9.99999997E-7 : f32
      %274 = vector.broadcast %cst_109 : f32 to vector<16x1xf32>
      %275 = arith.addf %273, %274 : vector<16x1xf32>
      %276 = tpu.reciprocal %275 {approx = true} : vector<16x1xf32> -> vector<16x1xf32>
      %277 = vector.broadcast %265 : vector<16x1xf32> to vector<16x32xf32>
      %278 = arith.subf %255, %277 : vector<16x32xf32>
      %279 = vector.broadcast %276 : vector<16x1xf32> to vector<16x32xf32>
      %280 = arith.mulf %278, %279 : vector<16x32xf32>
      %281 = vector.broadcast %260 : vector<1x32xf32> to vector<16x32xf32>
      %282 = arith.mulf %281, %280 : vector<16x32xf32>
      %283 = vector.broadcast %261 : vector<1x32xf32> to vector<16x32xf32>
      %284 = arith.addf %282, %283 : vector<16x32xf32>
      %285 = vector.shape_cast %284 : vector<16x32xf32> to vector<2x8x32xf32>
      %c0_110 = arith.constant 0 : index
      %c0_111 = arith.constant 0 : index
      %c0_112 = arith.constant 0 : index
      %286 = vector.load %arg18[%c0_110, %c0_111, %c0_112] : memref<2x8x32xf32, #tpu.memory_space<vmem>>, vector<2x8x32xf32>
      tpu.vector_store %arg18[%c0_110, %c0_111, %c0_112], %285 {strides = array<i32>} : memref<2x8x32xf32, #tpu.memory_space<vmem>>, vector<2x8x32xf32>,
    } else {
    }
    return
  }
  func.func @transform_0(%arg0: i32, %arg1: i32) -> (i32, i32, i32) {
    %c0_i32 = arith.constant 0 : i32
    %c0_i32_0 = arith.constant 0 : i32
    %c0_i32_1 = arith.constant 0 : i32
    return %arg0, %c0_i32, %c0_i32_0 : i32, i32, i32
  }
  func.func @transform_1(%arg0: i32, %arg1: i32) -> (i32, i32, i32) {
    %c0_i32 = arith.constant 0 : i32
    %c0_i32_0 = arith.constant 0 : i32
    %c0_i32_1 = arith.constant 0 : i32
    return %arg0, %c0_i32, %c0_i32_0 : i32, i32, i32
  }
  func.func @transform_2(%arg0: i32, %arg1: i32) -> (i32, i32, i32) {
    %c0_i32 = arith.constant 0 : i32
    %c0_i32_0 = arith.constant 0 : i32
    %c0_i32_1 = arith.constant 0 : i32
    return %arg1, %c0_i32, %c0_i32_0 : i32, i32, i32
  }
  func.func @transform_3(%arg0: i32, %arg1: i32) -> (i32, i32, i32) {
    %c0_i32 = arith.constant 0 : i32
    %c0_i32_0 = arith.constant 0 : i32
    %c0_i32_1 = arith.constant 0 : i32
    return %arg1, %c0_i32, %c0_i32_0 : i32, i32, i32
  }
  func.func @transform_4(%arg0: i32, %arg1: i32) -> (i32, i32, i32) {
    %c0_i32 = arith.constant 0 : i32
    %c0_i32_0 = arith.constant 0 : i32
    %c0_i32_1 = arith.constant 0 : i32
    return %arg1, %c0_i32, %c0_i32_0 : i32, i32, i32
  }
  func.func @transform_5(%arg0: i32, %arg1: i32) -> (i32, i32, i32) {
    %c0_i32 = arith.constant 0 : i32
    %c0_i32_0 = arith.constant 0 : i32
    %c0_i32_1 = arith.constant 0 : i32
    return %arg1, %c0_i32, %c0_i32_0 : i32, i32, i32
  }
  func.func @transform_6(%arg0: i32, %arg1: i32) -> (i32, i32, i32) {
    %c0_i32 = arith.constant 0 : i32
    %c0_i32_0 = arith.constant 0 : i32
    %c0_i32_1 = arith.constant 0 : i32
    return %arg1, %c0_i32, %c0_i32_0 : i32, i32, i32
  }
  func.func @transform_7(%arg0: i32, %arg1: i32) -> (i32, i32, i32) {
    %c0_i32 = arith.constant 0 : i32
    %c0_i32_0 = arith.constant 0 : i32
    %c0_i32_1 = arith.constant 0 : i32
    return %arg1, %c0_i32, %c0_i32_0 : i32, i32, i32
  }
  func.func @transform_8(%arg0: i32, %arg1: i32) -> (i32, i32, i32) {
    %c0_i32 = arith.constant 0 : i32
    %c0_i32_0 = arith.constant 0 : i32
    %c0_i32_1 = arith.constant 0 : i32
    return %arg1, %c0_i32, %c0_i32_0 : i32, i32, i32
  }
  func.func @transform_9(%arg0: i32, %arg1: i32) -> (i32, i32, i32) {
    %c0_i32 = arith.constant 0 : i32
    %c0_i32_0 = arith.constant 0 : i32
    %c0_i32_1 = arith.constant 0 : i32
    return %arg1, %c0_i32, %c0_i32_0 : i32, i32, i32
  }
  func.func @transform_10(%arg0: i32, %arg1: i32) -> (i32, i32, i32) {
    %c0_i32 = arith.constant 0 : i32
    %c0_i32_0 = arith.constant 0 : i32
    %c0_i32_1 = arith.constant 0 : i32
    return %arg1, %c0_i32, %c0_i32_0 : i32, i32, i32
  }
  func.func @transform_11(%arg0: i32, %arg1: i32) -> (i32, i32, i32) {
    %c0_i32 = arith.constant 0 : i32
    %c0_i32_0 = arith.constant 0 : i32
    %c0_i32_1 = arith.constant 0 : i32
    return %arg1, %c0_i32, %c0_i32_0 : i32, i32, i32
  }
  func.func @transform_12(%arg0: i32, %arg1: i32) -> (i32, i32, i32) {
    %c0_i32 = arith.constant 0 : i32
    %c0_i32_0 = arith.constant 0 : i32
    %c0_i32_1 = arith.constant 0 : i32
    return %arg1, %c0_i32, %c0_i32_0 : i32, i32, i32
  }
  func.func @transform_13(%arg0: i32, %arg1: i32) -> (i32, i32, i32) {
    %c0_i32 = arith.constant 0 : i32
    %c0_i32_0 = arith.constant 0 : i32
    %c0_i32_1 = arith.constant 0 : i32
    return %arg1, %c0_i32, %c0_i32_0 : i32, i32, i32
  }
  func.func @transform_14(%arg0: i32, %arg1: i32) -> (i32, i32) {
    %c0_i32 = arith.constant 0 : i32
    %c0_i32_0 = arith.constant 0 : i32
    %c0_i32_1 = arith.constant 0 : i32
    return %c0_i32, %c0_i32_0 : i32, i32
  }
  func.func @transform_15(%arg0: i32, %arg1: i32) -> (i32, i32) {
    %c0_i32 = arith.constant 0 : i32
    %c0_i32_0 = arith.constant 0 : i32
    %c0_i32_1 = arith.constant 0 : i32
    return %c0_i32, %c0_i32_0 : i32, i32
  }
  func.func @transform_16(%arg0: i32, %arg1: i32) -> (i32, i32, i32) {
    %c0_i32 = arith.constant 0 : i32
    %c0_i32_0 = arith.constant 0 : i32
    %c0_i32_1 = arith.constant 0 : i32
    return %arg0, %c0_i32, %c0_i32_0 : i32, i32, i32
  }
}

</mosaic_0001>

<bundles_post_ra>
// kernel: tpu_custom_call.1
= control target key start
LH: loop header
LB: loop body
LE: loop exit
PB: predicated region body
PF: predicated region fallthrough
CT: control target
= control target key end

     0   :  { %s4482_s0 = inlined_call_operand.hbm [shape: f32[2,8,32], index: 0, kind: input, shape index: {}]   ;;  %s4483_s1 = inlined_call_operand.vmem [shape: f32[2,1,8], index: 1, kind: input, shape index: {}]   ;;  %s4484_s2 = inlined_call_operand.vmem [shape: f32[2,1,32], index: 2, kind: input, shape index: {}]   ;;  %s4485_s3 = inlined_call_operand.vmem [shape: f32[2,1,32], index: 3, kind: input, shape index: {}]   ;;  %s4486_s4 = inlined_call_operand.vmem [shape: f32[2,32,96], index: 4, kind: input, shape index: {}]   ;;  %s4487_s5 = inlined_call_operand.vmem [shape: f32[2,1,96], index: 5, kind: input, shape index: {}]   ;;  %s4488_s6 = inlined_call_operand.vmem [shape: f32[2,32,32], index: 6, kind: input, shape index: {}]   ;;  %s4489_s7 = inlined_call_operand.vmem [shape: f32[2,1,32], index: 7, kind: input, shape index: {}]   ;;  %s4490_s8 = inlined_call_operand.vmem [shape: f32[2,1,32], index: 8, kind: input, shape index: {}]   ;;  %s4491_s9 = inlined_call_operand.vmem [shape: f32[2,1,32], index: 9, kind: input, shape index: {}]   ;;  %s4492_s10 = inlined_call_operand.vmem [shape: f32[2,32,64], index: 10, kind: input, shape index: {}]   ;;  %s4493_s11 = inlined_call_operand.vmem [shape: f32[2,1,64], index: 11, kind: input, shape index: {}]   ;;  %s4494_s12 = inlined_call_operand.vmem [shape: f32[2,64,32], index: 12, kind: input, shape index: {}]   ;;  %s4495_s13 = inlined_call_operand.vmem [shape: f32[2,1,32], index: 13, kind: input, shape index: {}]   ;;  %s4496_s14 = inlined_call_operand.vmem [shape: f32[1,32], index: 14, kind: input, shape index: {}]   ;;  %s4497_s15 = inlined_call_operand.vmem [shape: f32[1,32], index: 15, kind: input, shape index: {}]   ;;  %s4498_s16 = inlined_call_operand.hbm [shape: f32[2,8,32], index: 16, kind: output, shape index: {}]  }
   0x1   :  { %4509 = sst [smem:[#allocation14_spill]] %s4482_s0 }
   0x2   :  { %4510 = sst [smem:[#allocation15_spill]] %s4486_s4 }
   0x3   :  { %4511 = sst [smem:[#allocation16_spill]] %s4488_s6 }
   0x4   :  { %4512 = sst [smem:[#allocation17_spill]] %s4496_s14 }
   0x5   :  { %4513 = sst [smem:[#allocation18_spill]] %s4497_s15 }
   0x6   :  { %4514 = sst [smem:[#allocation19_spill]] %s4498_s16 }
   0x7   :  { %21 = vsyncpa [#allocation5], 0 }
   0x8   :  { %22 = vsyncpa [#allocation6], 0  ;;  %s4008_s21 = smov 0   ;;  %s4010_s22 = smov 0  }
   0x9   :  { %s4012_s23 = smov 0  }
   0xa LB: > { %4515 = sst [smem:[#allocation10_spill]] %s3897_s22  ;;  %s4500_s24 = sadd.s32 4294967295, %s3901_s23   ;;  %s3901_s23 = sphi %s4012_s23, %s28_s23   ;;  %s3897_s22 = sphi %s4010_s22, %s4540_s22   ;;  %s3893_s21 = sphi %s4008_s21, %s4539_s21  }
   0xb   : > { %4516 = sst [smem:[#allocation11_spill]] %s3901_s23  ;;  %s37_s25 = sadd.s32 1, %s3897_s22 }
   0xc   : > { %p38_p0 = scmp.ge.s32.totalorder %s37_s25, 2  ;;  %p3364_p1 = scmp.ge.s32.totalorder %s3901_s23, 1 }
   0xd   : > { %p477_p2 = scmp.lt.s32.totalorder %s3901_s23, 3  ;;  %p4035_p4 = scmp.eq.s32.totalorder %s4500_s24, 0 }
   0xe   : > { %s4542_s25 = smov (%p38_p0, %s37_s25), 0  ;;  %s3903_s28 = smov [#allocation4]  }
   0xf   : > { %4517 = sst [smem:[#allocation12_spill]] %s4542_s25  ;;  %p4029_p3 = pnand %p3364_p1, %p477_p2 }
  0x10   : > { %s4519_s27 = scalar_select %p4035_p4, 1, 0 }
  0x11   : > { %s4518_s26 = scalar_select %p4029_p3, 1, 0 }
  0x12   : > { %p3709_p5 = pneg %p4029_p3  ;;  %s492_s29 = sshll.u32 %s3903_s28, 4  ;;  %s493_s29 = int_to_ptr.vmem [resolvable:$true] %s492_s29 }
  0x13   : > { %s4521_s18 = sld [smem:[#allocation14_spill]] }
  0x14   : > { %p4043_p6 = pnand %p4035_p4, %p3709_p5 }
  0x16   : > { %p3819_p8 = pneg %p4043_p6 }
  0x19   : > { %s3817_s19 = scalar_lea.hbm %s4521_s18, 256 }
  0x1a   : > { %p3818_p7 = scmp.ne.s32.totalorder %s4521_s18, %s3817_s19  ;;  %p3824_p11 = scmp.lt.u32.totalorder %s3817_s19, %s4521_s18 }
  0x1c   : > { %p3820_p9 = pnand %p3819_p8, %p3818_p7 }
  0x1e   : > { %p3821_p10 = pneg %p3820_p9 }
  0x20   : > { %p3826_p12 = pnand %p3824_p11, %p3821_p10 }
  0x22   : > { %3829 = shalt.err (!%p3826_p12)
}
  0x23   : > { %s3830_s22 = scalar_lea.vmem %s493_s29, 256  ;;  %p3838_p2 = scmp.lt.s32.totalorder %s493_s29, %s493_s29 }
  0x24   : > { %p3831_p13 = scmp.ne.s32.totalorder %s493_s29, %s3830_s22  ;;  %p3839_p5 = scmp.lt.s32.totalorder %s3830_s22, %s3830_s22 }
  0x26   : > { %p3833_p0 = pnand %p3831_p13, %p3819_p8  ;;  %p3840_p4 = por %p3839_p5, %p3838_p2 }
  0x28   : > { %p3834_p1 = pneg %p3833_p0 }
  0x2a   : > { %p3841_p3 = pnand %p3840_p4, %p3834_p1 }
  0x2c   : > { %3844 = shalt.err (!%p3841_p3)
}
  0x2d   : > { %s3904_s24 = smov 128   ;;  %s3905_s0 = smov 8  }
  0x2e   : > { %3712 = dma.hbm_to_vmem [thread:$0]  (!%p4043_p6), %s4521_s18, 256, %s493_s29, [#allocation5], %s3904_s24, %s3904_s24, %s3905_s0  }
  0x2f   : > { %p4522_p7 = scmp.ne.s32.totalorder %s4518_s26, 0 }
  0x31   : > { %602 = sbr.rel (%p4522_p7) target bundleno = 4988 (0x137c), region = 84 }
  0x38   : > { %p4523_p9 = scmp.ne.s32.totalorder %s4519_s27, 0 }
  0x3a   : > { %3884 = dma.done.wait (%p4523_p9), [#allocation5], 256  }
  0x3b   : > { %3886 = vsyncadd (%p4523_p9), [#allocation5], 4294967040  ;;  %p696_p3 = scmp.lt.s32.totalorder %s3893_s21, 1  ;;  %s4524_s4 = sld [smem:[#allocation15_spill]] }
  0x3c   : > { %s4525_s6 = sld [smem:[#allocation16_spill]]  ;;  %p3378_p4 = scmp.ne.s32.totalorder %s3893_s21, 0 }
  0x3d   : > { %s4071_s22 = scalar_select %p696_p3, %s3893_s21, 1 }
  0x3e   : > { %744 = sbr.rel (%p3378_p4) target bundleno = 69 (0x45), region = 92  ;;  %v745_v0 = vld [vmem:[#allocation4] sm:$0xff] (!%p3378_p4)  ;;  %vm747_vm0 = vcmask (!%p3378_p4), 261120   ;;  %v746_v1 = vld [vmem:[#allocation4 + $0x8] sm:$0xff] (!%p3378_p4)  ;;  %vm756_vm2 = vcmask (!%p3378_p4), 57344   ;;  %v3906_v4 = vmov (!%p3378_p4), 0.0  }
  0x3f   : > { %s3434_s28 = sshll.u32 %s4071_s22, 5  ;;  %s720_s14 = scalar_lea.vmem %s4490_s8, %s4071_s22  ;;  %v750_v2 = vld [vmem:[%s4483_s1] sm:$0x1] (!%p3378_p4)  ;;  %748 = vst.msk [vmem:[#allocation2] sm:$0xff] (!%p3378_p4), %vm747_vm0, %v745_v0  ;;  %749 = vst.msk [vmem:[#allocation2 + $0x8] sm:$0xff] (!%p3378_p4), %vm747_vm0, %v746_v1 }
  0x40   : > { %s723_s17 = scalar_lea.vmem %s4491_s9, %s4071_s22  ;;  %s739_s24 = scalar_lea.vmem %s4495_s13, %s4071_s22  ;;  %vm752_vm1 = vcmp.eq.f32.partialorder (!%p3378_p4), %v750_v2, 0.0  ;;  %v751_v3 = vld [vmem:[%s4483_s1 + $0x1] sm:$0x1] (!%p3378_p4) }
  0x41   : > { %s4089_s30 = scalar_lea.vmem %s4524_s4, %s3434_s28  ;;  %s4111_s4 = scalar_lea.vmem %s4492_s10, %s3434_s28  ;;  %v754_v5 = vsel (!%p3378_p4), %vm752_vm1, -1e+09, %v3906_v4  ;;  %vm753_vm3 = vcmp.eq.f32.partialorder (!%p3378_p4), %v751_v3, 0.0 }
  0x42   : > { %s4094_s23 = scalar_lea.vmem %s4525_s6, %s3434_s28  ;;  %s731_s6 = scalar_lea.vmem %s4493_s11, %s4071_s22  ;;  %757 = vst.msk [vmem:[#allocation3] sm:$0x1] (!%p3378_p4), %vm756_vm2, %v754_v5  ;;  %v755_v6 = vsel (!%p3378_p4), %vm753_vm3, -1e+09, %v3906_v4 }
  0x43   : > { %4526 = sst [smem:[#allocation13_spill]] %s4094_s23  ;;  %s3437_s23 = sshll.u32 %s4071_s22, 6  ;;  %758 = vst.msk [vmem:[#allocation3 + $0x1] sm:$0x1] (!%p3378_p4), %vm756_vm2, %v755_v6 }
  0x44   : > { %s4121_s27 = scalar_lea.vmem %s4494_s12, %s3437_s23 }
  0x45 PF: > { %vm763_vm4 = vcmask 261120   ;;  %v821_v21 = vld [vmem:[%s4089_s30] sm:$0xff]  ;;  %v822_v22 = vld [vmem:[%s4089_s30 + $0x8] sm:$0xff]  ;;  %v823_v23 = vld [vmem:[%s4089_s30 + $0x10] sm:$0xff]  ;;  %s4527_s16 = scalar_lea.vmem %s4484_s2, %s4071_s22  ;;  %s4528_s26 = scalar_lea.vmem %s4485_s3, %s4071_s22  ;;  %v3907_v53 = vmov 0.0   ;;  %vm3908_vm9 = vmmov 0  }
  0x46   : > { %v4134_v7 = vld [vmem:[#allocation2] sm:$0xff]  ;;  %v4136_v8 = vld [vmem:[#allocation2 + $0x8] sm:$0xff]  ;;  %v3669_v24 = vpack.c.bf16 %v822_v22, %v821_v21  ;;  %v824_v25 = vld [vmem:[%s4089_s30 + $0x18] sm:$0xff]  ;;  %3524 = vmatprep.subr.mxu1 %v3907_v53  ;;  %3526 = vmatprep.mubr.msk.f32.mxu1 %vm3908_vm9, %v3907_v53  ;;  %s4529_s28 = scalar_lea.vmem %s4487_s5, %s4071_s22  ;;  %s3909_s0 = smov 88   ;;  %vm927_vm10 = vcmask 64512   ;;  %vm3017_vm15 = vcmask 523264  }
  0x47   : > { %v764_v9 = vsel %vm763_vm4, %v4134_v7, 0.0  ;;  %v767_v10 = vsel %vm763_vm4, %v4136_v8, 0.0  ;;  %v3673_v26 = vpack.c.bf16 %v824_v25, %v823_v23  ;;  %v3379_v44 = vld [vmem:[%s4527_s16] ss:$0 sm:$0xff]  ;;  %s3910_s23 = smov 96   ;;  %s3911_s20 = smov 120  }
  0x48   : > { %765 = vadd.xlane.f32.xlu0 %v764_v9  ;;  %3670 = vmatprep.subr.bf16.mxu0 %v3669_v24  ;;  %v3380_v46 = vld [vmem:[%s4528_s26] ss:$0 sm:$0xff]  ;;  %s3912_s30 = smov 56   ;;  %s3913_s25 = smov 64  }
  0x49   : > { %3672 = vmatpush3.bf16.msra.mxu0 %v3669_v24  ;;  %v3381_v54 = vld [vmem:[%s4529_s28] ss:$0 sm:$0xff]  ;;  %v4194_v62 = vld [vmem:[#allocation3] ss:$0 sm:$0xff]  ;;  %s3914_s16 = smov 80   ;;  %s3915_s18 = smov 112  }
  0x4a   : > { %3674 = vmatprep.subr.bf16.mxu0 %v3673_v26  ;;  %s4530_s15 = sld [smem:[#allocation13_spill]]  ;;  %s3916_s26 = smov 72  }
  0x4b   : > { %s3917_s19 = smov 48   ;;  %s3918_s29 = smov 104  }
  0x4c   : > { %768 = vadd.xlane.f32.xlu0 %v767_v10  ;;  %s3919_s28 = smov 40   ;;  %p3427_p6 = scmp.ne.s32.totalorder %s3893_s21, 1 }
  0x4d   : > { %3676 = vmatpush3.bf16.msra.mxu0 %v3673_v26 }
  0x4e   : > { %3519 = vmatprep.subr.mxu0 %v3907_v53 }
  0x50   : > { %v4223_v21 = vld [vmem:[%s4530_s15 + $0x8] sm:$0xff]  ;;  %v4227_v22 = vld [vmem:[%s4530_s15] sm:$0xff] }
  0xd5   : > { %v766_v11 = vpop.xlane.xlu0 %765 }
  0xd6   : > { %v771_v12 = vmul.f32 0.03125, %v766_v11 }
  0xd8   : > { %v773_v13 = vsub.f32 %v4134_v7, %v771_v12 }
  0xd9   : > { %v769_v14 = vpop.xlane.xlu0 %768 }
  0xda   : > { %v772_v15 = vmul.f32 0.03125, %v769_v14  ;;  %v775_v16 = vmul.f32 %v773_v13, %v773_v13 }
  0xdc   : > { %v774_v17 = vsub.f32 %v4136_v8, %v772_v15  ;;  %v777_v18 = vsel %vm763_vm4, %v775_v16, 0.0 }
  0xdd   : > { %778 = vadd.xlane.f32.xlu1 %v777_v18 }
  0xde   : > { %v776_v19 = vmul.f32 %v774_v17, %v774_v17 }
  0xe0   : > { %v780_v20 = vsel %vm763_vm4, %v776_v19, 0.0 }
  0xe1   : > { %781 = vadd.xlane.f32.xlu1 %v780_v20 }
 0x16a   : > { %v779_v27 = vpop.xlane.xlu1 %778 }
 0x16b   : > { %v783_v28 = vmul.f32 0.032258064, %v779_v27 }
 0x16d   : > { %3761 = vrsqrt.f32 %v783_v28  ;;  %vm787_vm5 = vcmp.eq.f32.partialorder %v783_v28, inf  ;;  %v790_v33 = vand.u32 2147483648, %v783_v28  ;;  %vm789_vm6 = vcmp.eq.f32.partialorder %v783_v28, 0.0 }
 0x16e   : > { %v782_v29 = vpop.xlane.xlu1 %781 }
 0x16f   : > { %v784_v30 = vmul.f32 0.032258064, %v782_v29 }
 0x171   : > { %3763 = vrsqrt.f32 %v784_v30  ;;  %vm794_vm7 = vcmp.eq.f32.partialorder %v784_v30, inf  ;;  %v797_v39 = vand.u32 2147483648, %v784_v30  ;;  %vm796_vm8 = vcmp.eq.f32.partialorder %v784_v30, 0.0 }
 0x177   : > { %v3762_v31 = vpop.eup %3761 }
 0x178   : > { %v786_v32 = vmul.f32 %v3762_v31, %v783_v28 }
 0x17a   : > { %v788_v34 = vsel %vm787_vm5, %v783_v28, %v786_v32 }
 0x17b   : > { %v3764_v35 = vpop.eup %3763  ;;  %v791_v36 = vsel %vm789_vm6, %v790_v33, %v788_v34 }
 0x17c   : > { %v793_v37 = vmul.f32 %v3764_v35, %v784_v30  ;;  %v799_v38 = vadd.f32 1e-06, %v791_v36 }
 0x17e   : > { %v795_v40 = vsel %vm794_vm7, %v784_v30, %v793_v37  ;;  %3765 = vrcp.f32 %v799_v38 }
 0x17f   : > { %v798_v41 = vsel %vm796_vm8, %v797_v39, %v795_v40 }
 0x180   : > { %v800_v42 = vadd.f32 1e-06, %v798_v41 }
 0x182   : > { %3767 = vrcp.f32 %v800_v42 }
 0x188   : > { %v3766_v43 = vpop.eup %3765 }
 0x189   : > { %v803_v45 = vmul.f32 %v3766_v43, %v773_v13 }
 0x18b   : > { %v811_v47 = vmul.f32 %v3379_v44, %v803_v45 }
 0x18c   : > { %v3768_v48 = vpop.eup %3767 }
 0x18d   : > { %v804_v49 = vmul.f32 %v3768_v48, %v774_v17  ;;  %v819_v50 = vadd.f32 %v3380_v46, %v811_v47 }
 0x18f   : > { %v812_v51 = vmul.f32 %v3379_v44, %v804_v49  ;;  %3516 = vmatprep.mubr.msk.f32.mxu0 %vm763_vm4, %v819_v50 }
 0x191   : > { %v820_v52 = vadd.f32 %v3380_v46, %v812_v51 }
 0x193   : > { %3517 = vmatmul.mubr.msk.f32.vlgmr.msra.gmra.mrb[0].mxu0 %vm763_vm4, %v820_v52  ;;  %v4264_v52 = vld [vmem:[%s4530_s15 + $0x10] sm:$0xff] }
 0x194   : > { %3521 = vmatprep.mubr.msk.f32.mxu0 %vm3908_vm9, %v3907_v53 }
 0x266   : > { %v3518_v55 = vpop.f32.mrb[0].mxu0 }
 0x267   : > { %v4173_v56 = vadd.f32 %v3518_v55, %v3381_v54  ;;  %v904_v57 = vpop.f32.mrb[1].mxu0 }
 0x268   : > { %v4175_v58 = vadd.f32 %v3381_v54, %v904_v57 }
 0x26a   : > { %1091 = vrot.lane.b32.xlu1 %v4175_v58, %s3909_s0  ;;  %925 = vrot.lane.b32.xlu0 %v4175_v58, %s3910_s23 }
 0x26e   : > { %1089 = vrot.lane.b32.xlu1 %v4175_v58, %s3911_s20 }
 0x2dc   : > { %v926_v59 = vpop.permute.xlu0 %925  ;;  %v1092_v60 = vpop.permute.xlu1 %1091 }
 0x2dd   : > { %3520 = vmatpush3.xpose.msk.msra.mxu0 %vm927_vm10, %v926_v59 }
 0x2de   : > { %3529 = vmatprep.subr.mxu0 %v3907_v53 }
 0x2e0   : > { %3522 = vmatmul.mubr.msk.f32.vlgmr.msra.gmra.mrb[2].mxu0 %vm927_vm10, %v4175_v58  ;;  %v1090_v61 = vpop.permute.xlu1 %1089 }
 0x2e1   : > { %3530 = vmatpush3.xpose.msk.msra.mxu0 %vm927_vm10, %v1092_v60  ;;  %3531 = vmatprep.mubr.msk.f32.mxu0 %vm3908_vm9, %v3907_v53 }
 0x2e2   : > { %3539 = vmatprep.subr.mxu0 %v3907_v53 }
 0x2e4   : > { %3532 = vmatmul.mubr.msk.f32.vlgmr.msra.gmra.mrb[4].mxu0 %vm927_vm10, %v1090_v61 }
 0x2e5   : > { %3541 = vmatprep.mubr.msk.f32.mxu0 %vm3908_vm9, %v3907_v53  ;;  %3540 = vmatpush3.msra.mxu0 %v4223_v21 }
 0x2e6   : > { %3549 = vmatprep.subr.mxu0 %v3907_v53 }
 0x3b3   : > { %v998_v63 = vpop.f32.mrb[2].mxu0 }
 0x3b4   : > { %v999_v0 = vadd.f32 %v4194_v62, %v998_v63  ;;  %v3523_v1 = vpop.f32.mrb[3].mxu0 }
 0x3b6   : > { %v1002_v2 = vsel %vm927_vm10, %v999_v0, -inf }
 0x3b7   : > { %1003 = vmax.xlane.f32.xlu1 %v1002_v2  ;;  %v1163_v3 = vpop.f32.mrb[4].mxu0 }
 0x3b8   : > { %v1164_v4 = vadd.f32 %v4194_v62, %v1163_v3  ;;  %v3533_v5 = vpop.f32.mrb[5].mxu0 }
 0x3ba   : > { %v1167_v6 = vsel %vm927_vm10, %v1164_v4, -inf }
 0x3bb   : > { %1168 = vmax.xlane.f32.xlu0 %v1167_v6 }
 0x3c8   : > { %1176 = vrot.lane.b32.xlu1 %v4175_v58, %s3912_s30 }
 0x3d1   : > { %1011 = vrot.lane.b32.xlu0 %v4175_v58, %s3913_s25 }
 0x3d5   : > { %1402 = vrot.lane.b32.xlu0 %v4175_v58, %s3914_s16 }
 0x3d9   : > { %1400 = vrot.lane.b32.xlu0 %v4175_v58, %s3915_s18 }
 0x444   : > { %v1004_v9 = vpop.xlane.xlu1 %1003 }
 0x445   : > { %v1005_v10 = vsub.f32 %v999_v0, %v1004_v9 }
 0x447   : > { %v1006_v11 = vmul.f32 1.442695, %v1005_v10 }
 0x448   : > { %v1169_v12 = vpop.xlane.xlu0 %1168  ;;  %v1177_v17 = vpop.permute.xlu1 %1176 }
 0x449   : > { %3769 = vpow2.f32 %v1006_v11  ;;  %v1170_v13 = vsub.f32 %v1164_v4, %v1169_v12 }
 0x44b   : > { %v1171_v14 = vmul.f32 1.442695, %v1170_v13 }
 0x44c   : > { %v1012_v15 = vpop.permute.xlu0 %1011 }
 0x44d   : > { %3771 = vpow2.f32 %v1171_v14  ;;  %3525 = vmatpush3.msra.mxu1 %v1012_v15  ;;  %v4299_v14 = vld [vmem:[%s4530_s15 + $0x18] sm:$0xff] }
 0x44e   : > { %3534 = vmatprep.subr.mxu1 %v3907_v53 }
 0x450   : > { %v1403_v23 = vpop.permute.xlu0 %1402 }
 0x453   : > { %v3770_v16 = vpop.eup %3769 }
 0x454   : > { %3527 = vmatmul.mubr.msk.f32.vlgmr.msra.gmra.mrb[0].mxu1 %vm927_vm10, %v3770_v16  ;;  %v1008_v18 = vsel %vm927_vm10, %v3770_v16, 0.0  ;;  %v1401_v24 = vpop.permute.xlu0 %1400 }
 0x455   : > { %3535 = vmatpush3.msra.mxu1 %v1177_v17  ;;  %1009 = vadd.xlane.f32.xlu0 %v1008_v18 }
 0x456   : > { %3536 = vmatprep.mubr.msk.f32.mxu1 %vm3908_vm9, %v3907_v53  ;;  %3544 = vmatprep.subr.mxu1 %v3907_v53 }
 0x457   : > { %v3772_v19 = vpop.eup %3771 }
 0x458   : > { %3537 = vmatmul.mubr.msk.f32.vlgmr.msra.gmra.mrb[2].mxu1 %vm927_vm10, %v3772_v19  ;;  %v1173_v20 = vsel %vm927_vm10, %v3772_v19, 0.0 }
 0x459   : > { %1174 = vadd.xlane.f32.xlu1 %v1173_v20  ;;  %3546 = vmatprep.mubr.msk.f32.mxu1 %vm3908_vm9, %v3907_v53  ;;  %v4303_v20 = vld [vmem:[#allocation3 + $0x1] ss:$0 sm:$0xff] }
 0x45a   : > { %3545 = vmatpush3.msra.mxu1 %v4227_v22 }
 0x45b   : > { %3554 = vmatprep.subr.mxu1 %v3907_v53 }
 0x46a   : > { %1641 = vrot.lane.b32.xlu1 %v4175_v58, %s3916_s26 }
 0x46b   : > { %1487 = vrot.lane.b32.xlu0 %v4175_v58, %s3917_s19 }
 0x4e2   : > { %v1010_v25 = vpop.xlane.xlu0 %1009 }
 0x4e3   : > { %3773 = vrcp.f32 %v1010_v25 }
 0x4e6   : > { %v1175_v26 = vpop.xlane.xlu1 %1174  ;;  %v1488_v31 = vpop.permute.xlu0 %1487 }
 0x4e7   : > { %3775 = vrcp.f32 %v1175_v26 }
 0x4ea   : > { %v1642_v45 = vpop.permute.xlu1 %1641 }
 0x4ed   : > { %v3774_v27 = vpop.eup %3773 }
 0x4f1   : > { %v3776_v32 = vpop.eup %3775 }
 0x527   : > { %v1083_v28 = vpop.f32.mrb[0].mxu1 }
 0x528   : > { %v1088_v29 = vmul.f32 %v3774_v27, %v1083_v28  ;;  %v3528_v30 = vpop.f32.mrb[1].mxu1 }
 0x52a   : > { %3547 = vmatmul.mubr.msk.f32.vlgmr.msra.gmra.mrb[4].mxu1 %vm927_vm10, %v1088_v29 }
 0x52b   : > { %3555 = vmatpush3.msra.mxu1 %v1488_v31  ;;  %v1248_v33 = vpop.f32.mrb[2].mxu1  ;;  %3556 = vmatprep.mubr.msk.f32.mxu1 %vm3908_vm9, %v3907_v53 }
 0x52c   : > { %v1253_v34 = vmul.f32 %v3776_v32, %v1248_v33  ;;  %v3538_v35 = vpop.f32.mrb[3].mxu1  ;;  %3564 = vmatprep.subr.mxu1 %v3907_v53 }
 0x52e   : > { %3542 = vmatmul.mubr.msk.f32.vlgmr.msra.gmra.mrb[6].mxu0 %vm927_vm10, %v1253_v34 }
 0x52f   : > { %3550 = vmatpush3.xpose.msk.msra.mxu0 %vm927_vm10, %v1403_v23  ;;  %3551 = vmatprep.mubr.msk.f32.mxu0 %vm3908_vm9, %v3907_v53 }
 0x530   : > { %3559 = vmatprep.subr.mxu0 %v3907_v53 }
 0x532   : > { %3552 = vmatmul.mubr.msk.f32.vlgmr.msra.gmra.mrb[8].mxu0 %vm927_vm10, %v1401_v24 }
 0x533   : > { %3561 = vmatprep.mubr.msk.f32.mxu0 %vm3908_vm9, %v3907_v53  ;;  %3560 = vmatpush3.msra.mxu0 %v4264_v52 }
 0x534   : > { %3569 = vmatprep.subr.mxu0 %v3907_v53 }
 0x5fd   : > { %v1396_v36 = vpop.f32.mrb[4].mxu1 }
 0x5fe   : > { %v3548_v37 = vpop.f32.mrb[5].mxu1 }
 0x601   : > { %v1323_v38 = vpop.f32.mrb[6].mxu0 }
 0x602   : > { %v4244_v39 = vadd.f32 %v1396_v36, %v1323_v38  ;;  %v3543_v40 = vpop.f32.mrb[7].mxu0 }
 0x605   : > { %v1474_v41 = vpop.f32.mrb[8].mxu0 }
 0x606   : > { %v1475_v42 = vadd.f32 %v4194_v62, %v1474_v41  ;;  %v3553_v43 = vpop.f32.mrb[9].mxu0 }
 0x608   : > { %v1478_v44 = vsel %vm927_vm10, %v1475_v42, -inf }
 0x609   : > { %1479 = vmax.xlane.f32.xlu1 %v1478_v44 }
 0x61a   : > { %1639 = vrot.lane.b32.xlu1 %v4175_v58, %s3918_s29 }
 0x696   : > { %v1480_v46 = vpop.xlane.xlu1 %1479 }
 0x697   : > { %v1481_v47 = vsub.f32 %v1475_v42, %v1480_v46 }
 0x699   : > { %v1482_v48 = vmul.f32 1.442695, %v1481_v47 }
 0x69a   : > { %v1640_v51 = vpop.permute.xlu1 %1639 }
 0x69b   : > { %3777 = vpow2.f32 %v1482_v48 }
 0x6a5   : > { %v3778_v49 = vpop.eup %3777 }
 0x6a6   : > { %3557 = vmatmul.mubr.msk.f32.vlgmr.msra.gmra.mrb[6].mxu1 %vm927_vm10, %v3778_v49  ;;  %v1484_v50 = vsel %vm927_vm10, %v3778_v49, 0.0 }
 0x6a7   : > { %3565 = vmatpush3.xpose.msk.msra.mxu1 %vm927_vm10, %v1642_v45  ;;  %1485 = vadd.xlane.f32.xlu1 %v1484_v50 }
 0x6a8   : > { %3566 = vmatprep.mubr.msk.f32.mxu1 %vm3908_vm9, %v3907_v53  ;;  %3574 = vmatprep.subr.mxu1 %v3907_v53 }
 0x6aa   : > { %3567 = vmatmul.mubr.msk.f32.vlgmr.msra.gmra.mrb[8].mxu1 %vm927_vm10, %v1640_v51 }
 0x6ab   : > { %3576 = vmatprep.mubr.msk.f32.mxu1 %vm3908_vm9, %v3907_v53  ;;  %3575 = vmatpush3.msra.mxu1 %v4299_v14 }
 0x6ac   : > { %3584 = vmatprep.subr.mxu1 %v3907_v53 }
 0x6b8   : > { %1887 = vrot.lane.b32.xlu1 %v4173_v56, %s3910_s23 }
 0x6bc   : > { %2052 = vrot.lane.b32.xlu1 %v4173_v56, %s3909_s0 }
 0x734   : > { %v1486_v54 = vpop.xlane.xlu1 %1485 }
 0x735   : > { %3779 = vrcp.f32 %v1486_v54 }
 0x73f   : > { %v3780_v55 = vpop.eup %3779 }
 0x779   : > { %v1559_v57 = vpop.f32.mrb[6].mxu1 }
 0x77a   : > { %v1564_v59 = vmul.f32 %v3780_v55, %v1559_v57  ;;  %v3558_v60 = vpop.f32.mrb[7].mxu1 }
 0x77c   : > { %3562 = vmatmul.mubr.msk.f32.vlgmr.msra.gmra.mrb[10].mxu0 %vm927_vm10, %v1564_v59 }
 0x77d   : > { %v1713_v61 = vpop.f32.mrb[8].mxu1  ;;  %3571 = vmatprep.mubr.msk.f32.mxu0 %vm3908_vm9, %v3907_v53 }
 0x77e   : > { %v1714_v63 = vadd.f32 %v4194_v62, %v1713_v61  ;;  %v3568_v0 = vpop.f32.mrb[9].mxu1  ;;  %v1888_v62 = vpop.permute.xlu1 %1887 }
 0x780   : > { %v1717_v1 = vsel %vm927_vm10, %v1714_v63, -inf }
 0x781   : > { %1718 = vmax.xlane.f32.xlu0 %v1717_v1 }
 0x797   : > { %1726 = vrot.lane.b32.xlu0 %v4175_v58, %s3919_s28  ;;  %v2053_v58 = vpop.permute.xlu1 %2052 }
 0x79b   : > { %2050 = vrot.lane.b32.xlu0 %v4173_v56, %s3911_s20  ;;  %s4531_s20 = scalar_lea.vmem %s4489_s7, %s4071_s22  ;;  %s4532_s22 = sld [smem:[#allocation17_spill]] (!%p3427_p6) }
 0x80e   : > { %v1719_v2 = vpop.xlane.xlu0 %1718 }
 0x80f   : > { %v1720_v3 = vsub.f32 %v1714_v63, %v1719_v2 }
 0x811   : > { %v1721_v4 = vmul.f32 1.442695, %v1720_v3 }
 0x812   : > { %v1727_v5 = vpop.permute.xlu0 %1726 }
 0x813   : > { %3781 = vpow2.f32 %v1721_v4  ;;  %3570 = vmatpush3.msra.mxu0 %v1727_v5 }
 0x814   : > { %3579 = vmatprep.subr.mxu0 %v3907_v53 }
 0x816   : > { %v2051_v10 = vpop.permute.xlu0 %2050 }
 0x81d   : > { %v3782_v6 = vpop.eup %3781 }
 0x81e   : > { %3572 = vmatmul.mubr.msk.f32.vlgmr.msra.gmra.mrb[12].mxu0 %vm927_vm10, %v3782_v6  ;;  %v1723_v9 = vsel %vm927_vm10, %v3782_v6, 0.0 }
 0x81f   : > { %3580 = vmatpush3.xpose.msk.msra.mxu0 %vm927_vm10, %v1888_v62  ;;  %1724 = vadd.xlane.f32.xlu1 %v1723_v9 }
 0x820   : > { %3581 = vmatprep.mubr.msk.f32.mxu0 %vm3908_vm9, %v3907_v53  ;;  %3589 = vmatprep.subr.mxu0 %v3907_v53 }
 0x822   : > { %3582 = vmatmul.mubr.msk.f32.vlgmr.msra.gmra.mrb[14].mxu0 %vm927_vm10, %v4173_v56 }
 0x823   : > { %3590 = vmatpush3.xpose.msk.msra.mxu0 %vm927_vm10, %v2053_v58  ;;  %3591 = vmatprep.mubr.msk.f32.mxu0 %vm3908_vm9, %v3907_v53 }
 0x824   : > { %3599 = vmatprep.subr.mxu0 %v3907_v53 }
 0x826   : > { %3592 = vmatmul.mubr.msk.f32.vlgmr.msra.gmra.mrb[16].mxu0 %vm927_vm10, %v2051_v10 }
 0x827   : > { %3600 = vmatpush3.msra.mxu0 %v4223_v21  ;;  %3601 = vmatprep.mubr.msk.f32.mxu0 %vm3908_vm9, %v3907_v53 }
 0x828   : > { %3609 = vmatprep.subr.mxu0 %v3907_v53 }
 0x830   : > { %2137 = vrot.lane.b32.xlu1 %v4173_v56, %s3912_s30 }
 0x84f   : > { %v1634_v11 = vpop.f32.mrb[10].mxu0 }
 0x850   : > { %v1638_v12 = vadd.f32 %v1634_v11, %v4244_v39  ;;  %v3563_v13 = vpop.f32.mrb[11].mxu0 }
 0x8ac   : > { %v1725_v15 = vpop.xlane.xlu1 %1724 }
 0x8ad   : > { %3783 = vrcp.f32 %v1725_v15 }
 0x8b0   : > { %v2138_v38 = vpop.permute.xlu1 %2137 }
 0x8b7   : > { %v3784_v16 = vpop.eup %3783 }
 0x8f1   : > { %v1798_v17 = vpop.f32.mrb[12].mxu0 }
 0x8f2   : > { %v1803_v18 = vmul.f32 %v3784_v16, %v1798_v17  ;;  %v3573_v19 = vpop.f32.mrb[13].mxu0 }
 0x8f4   : > { %3577 = vmatmul.mubr.msk.f32.vlgmr.msra.gmra.mrb[10].mxu1 %vm927_vm10, %v1803_v18 }
 0x8f5   : > { %v1959_v21 = vpop.f32.mrb[14].mxu0  ;;  %3586 = vmatprep.mubr.msk.f32.mxu1 %vm3908_vm9, %v3907_v53 }
 0x8f6   : > { %v1960_v23 = vadd.f32 %v4303_v20, %v1959_v21  ;;  %v3583_v24 = vpop.f32.mrb[15].mxu0 }
 0x8f8   : > { %v1963_v25 = vsel %vm927_vm10, %v1960_v23, -inf }
 0x8f9   : > { %1964 = vmax.xlane.f32.xlu0 %v1963_v25  ;;  %v2124_v26 = vpop.f32.mrb[16].mxu0 }
 0x8fa   : > { %v2125_v27 = vadd.f32 %v4303_v20, %v2124_v26  ;;  %v3593_v28 = vpop.f32.mrb[17].mxu0 }
 0x8fc   : > { %v2128_v29 = vsel %vm927_vm10, %v2125_v27, -inf }
 0x8fd   : > { %2129 = vmax.xlane.f32.xlu0 %v2128_v29 }
 0x913   : > { %1972 = vrot.lane.b32.xlu0 %v4173_v56, %s3913_s25 }
 0x917   : > { %2363 = vrot.lane.b32.xlu0 %v4173_v56, %s3914_s16 }
 0x91b   : > { %2361 = vrot.lane.b32.xlu0 %v4173_v56, %s3915_s18 }
 0x986   : > { %v1965_v30 = vpop.xlane.xlu0 %1964 }
 0x987   : > { %v1966_v31 = vsub.f32 %v1960_v23, %v1965_v30 }
 0x989   : > { %v1967_v32 = vmul.f32 1.442695, %v1966_v31 }
 0x98a   : > { %v2130_v33 = vpop.xlane.xlu0 %2129 }
 0x98b   : > { %3785 = vpow2.f32 %v1967_v32  ;;  %v2131_v34 = vsub.f32 %v2125_v27, %v2130_v33 }
 0x98d   : > { %v2132_v35 = vmul.f32 1.442695, %v2131_v34 }
 0x98e   : > { %v1973_v36 = vpop.permute.xlu0 %1972 }
 0x98f   : > { %3787 = vpow2.f32 %v2132_v35  ;;  %3585 = vmatpush3.msra.mxu1 %v1973_v36 }
 0x990   : > { %3594 = vmatprep.subr.mxu1 %v3907_v53 }
 0x992   : > { %v2364_v45 = vpop.permute.xlu0 %2363 }
 0x995   : > { %v3786_v37 = vpop.eup %3785 }
 0x996   : > { %3587 = vmatmul.mubr.msk.f32.vlgmr.msra.gmra.mrb[12].mxu1 %vm927_vm10, %v3786_v37  ;;  %v1969_v39 = vsel %vm927_vm10, %v3786_v37, 0.0  ;;  %v2362_v46 = vpop.permute.xlu0 %2361 }
 0x997   : > { %3595 = vmatpush3.msra.mxu1 %v2138_v38  ;;  %1970 = vadd.xlane.f32.xlu0 %v1969_v39 }
 0x998   : > { %3596 = vmatprep.mubr.msk.f32.mxu1 %vm3908_vm9, %v3907_v53  ;;  %3604 = vmatprep.subr.mxu1 %v3907_v53 }
 0x999   : > { %v3788_v40 = vpop.eup %3787 }
 0x99a   : > { %3597 = vmatmul.mubr.msk.f32.vlgmr.msra.gmra.mrb[14].mxu1 %vm927_vm10, %v3788_v40  ;;  %v2134_v41 = vsel %vm927_vm10, %v3788_v40, 0.0 }
 0x99b   : > { %2135 = vadd.xlane.f32.xlu1 %v2134_v41  ;;  %3605 = vmatpush3.msra.mxu1 %v4227_v22 }
 0x99c   : > { %3606 = vmatprep.mubr.msk.f32.mxu1 %vm3908_vm9, %v3907_v53  ;;  %3614 = vmatprep.subr.mxu1 %v3907_v53 }
 0x9ac   : > { %2448 = vrot.lane.b32.xlu1 %v4173_v56, %s3917_s19 }
 0x9ad   : > { %2602 = vrot.lane.b32.xlu0 %v4173_v56, %s3916_s26  ;;  %s4533_s26 = sld [smem:[#allocation18_spill]] (!%p3427_p6) }
 0x9c7   : > { %v1873_v42 = vpop.f32.mrb[10].mxu1 }
 0x9c8   : > { %v4334_v43 = vadd.f32 %v1873_v42, %v1638_v12  ;;  %v3578_v44 = vpop.f32.mrb[11].mxu1 }
 0x9ca   : > { %v2839_v28 = vadd.f32 %v4334_v43, %v4134_v7 }
 0xa24   : > { %v1971_v47 = vpop.xlane.xlu0 %1970 }
 0xa25   : > { %3789 = vrcp.f32 %v1971_v47 }
 0xa28   : > { %v2136_v22 = vpop.xlane.xlu1 %2135  ;;  %v2603_v10 = vpop.permute.xlu0 %2602 }
 0xa29   : > { %3791 = vrcp.f32 %v2136_v22 }
 0xa2c   : > { %v2449_v54 = vpop.permute.xlu1 %2448 }
 0xa2f   : > { %v3790_v48 = vpop.eup %3789 }
 0xa33   : > { %v3792_v55 = vpop.eup %3791 }
 0xa69   : > { %v2044_v49 = vpop.f32.mrb[12].mxu1 }
 0xa6a   : > { %v2049_v50 = vmul.f32 %v3790_v48, %v2044_v49  ;;  %v3588_v51 = vpop.f32.mrb[13].mxu1 }
 0xa6c   : > { %3607 = vmatmul.mubr.msk.f32.vlgmr.msra.gmra.mrb[16].mxu1 %vm927_vm10, %v2049_v50 }
 0xa6d   : > { %3615 = vmatpush3.msra.mxu1 %v2449_v54  ;;  %v2209_v57 = vpop.f32.mrb[14].mxu1  ;;  %3616 = vmatprep.mubr.msk.f32.mxu1 %vm3908_vm9, %v3907_v53 }
 0xa6e   : > { %v2214_v59 = vmul.f32 %v3792_v55, %v2209_v57  ;;  %v3598_v60 = vpop.f32.mrb[15].mxu1  ;;  %3624 = vmatprep.subr.mxu1 %v3907_v53 }
 0xa70   : > { %3602 = vmatmul.mubr.msk.f32.vlgmr.msra.gmra.mrb[18].mxu0 %vm927_vm10, %v2214_v59 }
 0xa71   : > { %3610 = vmatpush3.xpose.msk.msra.mxu0 %vm927_vm10, %v2364_v45  ;;  %3611 = vmatprep.mubr.msk.f32.mxu0 %vm3908_vm9, %v3907_v53 }
 0xa72   : > { %3619 = vmatprep.subr.mxu0 %v3907_v53 }
 0xa74   : > { %3612 = vmatmul.mubr.msk.f32.vlgmr.msra.gmra.mrb[20].mxu0 %vm927_vm10, %v2362_v46 }
 0xa75   : > { %3620 = vmatpush3.msra.mxu0 %v4264_v52  ;;  %3621 = vmatprep.mubr.msk.f32.mxu0 %vm3908_vm9, %v3907_v53 }
 0xa76   : > { %3629 = vmatprep.subr.mxu0 %v3907_v53 }
 0xb3f   : > { %v2357_v61 = vpop.f32.mrb[16].mxu1 }
 0xb40   : > { %v3608_v63 = vpop.f32.mrb[17].mxu1 }
 0xb43   : > { %v2284_v0 = vpop.f32.mrb[18].mxu0 }
 0xb44   : > { %v2358_v1 = vadd.f32 %v2357_v61, %v2284_v0  ;;  %v3603_v2 = vpop.f32.mrb[19].mxu0 }
 0xb45   : > { %v3419_v2 = vld [vmem:[%s720_s14] ss:$0 sm:$0xff] }
 0xb47   : > { %v2435_v3 = vpop.f32.mrb[20].mxu0 }
 0xb48   : > { %v2436_v4 = vadd.f32 %v4303_v20, %v2435_v3  ;;  %v3613_v5 = vpop.f32.mrb[21].mxu0 }
 0xb4a   : > { %v2439_v62 = vsel %vm927_vm10, %v2436_v4, -inf }
 0xb4b   : > { %2440 = vmax.xlane.f32.xlu1 %v2439_v62 }
 0xb5c   : > { %2600 = vrot.lane.b32.xlu1 %v4173_v56, %s3918_s29 }
 0xbd8   : > { %v2441_v52 = vpop.xlane.xlu1 %2440 }
 0xbd9   : > { %v2442_v6 = vsub.f32 %v2436_v4, %v2441_v52  ;;  %v3420_v4 = vld [vmem:[%s723_s17] ss:$0 sm:$0xff] }
 0xbda   : > { %v2908_v52 = vld [vmem:[%s4111_s4] sm:$0xff] }
 0xbdb   : > { %v2443_v9 = vmul.f32 1.442695, %v2442_v6  ;;  %v2909_v6 = vld [vmem:[%s4111_s4 + $0x8] sm:$0xff] }
 0xbdc   : > { %v2601_v12 = vpop.permute.xlu1 %2600 }
 0xbdd   : > { %3793 = vpow2.f32 %v2443_v9  ;;  %v2910_v9 = vld [vmem:[%s4111_s4 + $0x10] sm:$0xff] }
 0xbe7   : > { %v3794_v58 = vpop.eup %3793 }
 0xbe8   : > { %3617 = vmatmul.mubr.msk.f32.vlgmr.msra.gmra.mrb[18].mxu1 %vm927_vm10, %v3794_v58  ;;  %v2445_v11 = vsel %vm927_vm10, %v3794_v58, 0.0  ;;  %v3677_v58 = vpack.c.bf16 %v2909_v6, %v2908_v52 }
 0xbe9   : > { %3625 = vmatpush3.xpose.msk.msra.mxu1 %vm927_vm10, %v2603_v10  ;;  %2446 = vadd.xlane.f32.xlu1 %v2445_v11  ;;  %v2911_v10 = vld [vmem:[%s4111_s4 + $0x18] sm:$0xff] }
 0xbea   : > { %3626 = vmatprep.mubr.msk.f32.mxu1 %vm3908_vm9, %v3907_v53  ;;  %3634 = vmatprep.subr.mxu1 %v3907_v53  ;;  %v3681_v11 = vpack.c.bf16 %v2911_v10, %v2910_v9 }
 0xbec   : > { %3627 = vmatmul.mubr.msk.f32.vlgmr.msra.gmra.mrb[20].mxu1 %vm927_vm10, %v2601_v12  ;;  %v3002_v12 = vld [vmem:[%s4121_s27] sm:$0xff] }
 0xbed   : > { %3635 = vmatpush3.msra.mxu1 %v4299_v14  ;;  %3636 = vmatprep.mubr.msk.f32.mxu1 %vm3908_vm9, %v3907_v53 }
 0xc76   : > { %v2447_v13 = vpop.xlane.xlu1 %2446 }
 0xc77   : > { %3795 = vrcp.f32 %v2447_v13  ;;  %v3003_v13 = vld [vmem:[%s4121_s27 + $0x8] sm:$0xff] }
 0xc81   : > { %v3796_v15 = vpop.eup %3795 }
 0xcbb   : > { %v2520_v16 = vpop.f32.mrb[18].mxu1 }
 0xcbc   : > { %v2525_v17 = vmul.f32 %v3796_v15, %v2520_v16  ;;  %v3618_v18 = vpop.f32.mrb[19].mxu1  ;;  %v3004_v15 = vld [vmem:[%s4121_s27 + $0x10] sm:$0xff]  ;;  %v3685_v16 = vpack.c.bf16 %v3003_v13, %v3002_v12 }
 0xcbe   : > { %3622 = vmatmul.mubr.msk.f32.vlgmr.msra.gmra.mrb[22].mxu0 %vm927_vm10, %v2525_v17  ;;  %v3005_v17 = vld [vmem:[%s4121_s27 + $0x18] sm:$0xff]  ;;  %3686 = vmatprep.subr.bf16.mxu1 %v3685_v16 }
 0xcbf   : > { %v2674_v19 = vpop.f32.mrb[20].mxu1  ;;  %3631 = vmatprep.mubr.msk.f32.mxu0 %vm3908_vm9, %v3907_v53  ;;  %v3418_v53 = vld [vmem:[%s4531_s20] ss:$0 sm:$0xff]  ;;  %v3689_v18 = vpack.c.bf16 %v3005_v17, %v3004_v15 }
 0xcc0   : > { %v2675_v21 = vadd.f32 %v4303_v20, %v2674_v19  ;;  %v3628_v23 = vpop.f32.mrb[21].mxu1  ;;  %v4378_v29 = vadd.f32 %v3418_v53, %v2839_v28  ;;  %v3006_v19 = vld [vmem:[%s4121_s27 + $0x20] sm:$0xff] }
 0xcc2   : > { %v2678_v14 = vsel %vm927_vm10, %v2675_v21, -inf  ;;  %v2852_v30 = vsel %vm763_vm4, %v4378_v29, 0.0 }
 0xcc3   : > { %2679 = vmax.xlane.f32.xlu0 %v2678_v14 }
 0xcd9   : > { %2687 = vrot.lane.b32.xlu0 %v4173_v56, %s3919_s28 }
 0xd50   : > { %v2680_v24 = vpop.xlane.xlu0 %2679 }
 0xd51   : > { %v2681_v25 = vsub.f32 %v2675_v21, %v2680_v24  ;;  %v3007_v21 = vld [vmem:[%s4121_s27 + $0x28] sm:$0xff] }
 0xd52   : > { %v3693_v23 = vpack.c.bf16 %v3007_v21, %v3006_v19 }
 0xd53   : > { %v2682_v26 = vmul.f32 1.442695, %v2681_v25 }
 0xd54   : > { %v2688_v27 = vpop.permute.xlu0 %2687 }
 0xd55   : > { %3797 = vpow2.f32 %v2682_v26  ;;  %3630 = vmatpush3.msra.mxu0 %v2688_v27 }
 0xd56   : > { %3678 = vmatprep.subr.bf16.mxu0 %v3677_v58 }
 0xd5f   : > { %v3798_v20 = vpop.eup %3797 }
 0xd60   : > { %3632 = vmatmul.mubr.msk.f32.vlgmr.msra.gmra.mrb[24].mxu0 %vm927_vm10, %v3798_v20  ;;  %v2684_v56 = vsel %vm927_vm10, %v3798_v20, 0.0 }
 0xd61   : > { %2685 = vadd.xlane.f32.xlu1 %v2684_v56  ;;  %3680 = vmatpush3.bf16.msra.mxu0 %v3677_v58 }
 0xd62   : > { %3682 = vmatprep.subr.bf16.mxu0 %v3681_v11 }
 0xd65   : > { %2853 = vadd.xlane.f32.xlu1 %v2852_v30  ;;  %3684 = vmatpush3.bf16.msra.mxu0 %v3681_v11 }
 0xd91   : > { %v2595_v31 = vpop.f32.mrb[22].mxu0 }
 0xd92   : > { %v2599_v32 = vadd.f32 %v2595_v31, %v2358_v1  ;;  %v3623_v7 = vpop.f32.mrb[23].mxu0 }
 0xd93   : > { %v3008_v7 = vld [vmem:[%s4121_s27 + $0x30] sm:$0xff] }
 0xdee   : > { %v2686_v33 = vpop.xlane.xlu1 %2685 }
 0xdef   : > { %3799 = vrcp.f32 %v2686_v33  ;;  %v3009_v33 = vld [vmem:[%s4121_s27 + $0x38] sm:$0xff] }
 0xdf2   : > { %v2854_v38 = vpop.xlane.xlu1 %2853 }
 0xdf3   : > { %v2858_v39 = vmul.f32 0.03125, %v2854_v38 }
 0xdf5   : > { %v2860_v43 = vsub.f32 %v4378_v29, %v2858_v39 }
 0xdf7   : > { %v2862_v47 = vmul.f32 %v2860_v43, %v2860_v43 }
 0xdf9   : > { %v3800_v34 = vpop.eup %3799  ;;  %v2864_v22 = vsel %vm763_vm4, %v2862_v47, 0.0 }
 0xe33   : > { %v2759_v35 = vpop.f32.mrb[24].mxu0 }
 0xe34   : > { %v2764_v36 = vmul.f32 %v3800_v34, %v2759_v35  ;;  %v3633_v37 = vpop.f32.mrb[25].mxu0  ;;  %v3697_v34 = vpack.c.bf16 %v3009_v33, %v3008_v7  ;;  %v3421_v35 = vld [vmem:[%s731_s6] ss:$0 sm:$0xff] }
 0xe36   : > { %3637 = vmatmul.mubr.msk.f32.vlgmr.msra.gmra.mrb[22].mxu1 %vm927_vm10, %v2764_v36 }
 0xe37   : > { %3688 = vmatpush3.bf16.msra.mxu1 %v3685_v16  ;;  %v3428_v16 = vld [vmem:[%s4532_s22] ss:$0 sm:$0xff] (!%p3427_p6) }
 0xe38   : > { %3690 = vmatprep.subr.bf16.mxu1 %v3689_v18 }
 0xe3b   : > { %3692 = vmatpush3.bf16.msra.mxu1 %v3689_v18  ;;  %v3429_v18 = vld [vmem:[%s4533_s26] ss:$0 sm:$0xff] (!%p3427_p6) }
 0xe3c   : > { %3694 = vmatprep.subr.bf16.mxu1 %v3693_v23 }
 0xe3f   : > { %3696 = vmatpush3.bf16.msra.mxu1 %v3693_v23 }
 0xe40   : > { %3698 = vmatprep.subr.bf16.mxu1 %v3697_v34 }
 0xe43   : > { %3700 = vmatpush3.bf16.msra.mxu1 %v3697_v34 }
 0xf09   : > { %v2834_v40 = vpop.f32.mrb[22].mxu1 }
 0xf0a   : > { %v2838_v41 = vadd.f32 %v2834_v40, %v2599_v32  ;;  %v3638_v42 = vpop.f32.mrb[23].mxu1 }
 0xf0b   : > { %v3424_v42 = vld [vmem:[%s739_s24] ss:$0 sm:$0xff] }
 0xf0c   : > { %v2840_v44 = vadd.f32 %v2838_v41, %v4136_v8 }
 0xf0e   : > { %v4387_v45 = vadd.f32 %v3418_v53, %v2840_v44 }
 0xf10   : > { %v2855_v46 = vsel %vm763_vm4, %v4387_v45, 0.0 }
 0xf11   : > { %2856 = vadd.xlane.f32.xlu1 %v2855_v46 }
 0xf15   : > { %2865 = vadd.xlane.f32.xlu1 %v2864_v22 }
 0xf9e   : > { %v2857_v48 = vpop.xlane.xlu1 %2856 }
 0xf9f   : > { %v2859_v49 = vmul.f32 0.03125, %v2857_v48 }
 0xfa1   : > { %v2861_v50 = vsub.f32 %v4387_v45, %v2859_v49 }
 0xfa2   : > { %v2866_v51 = vpop.xlane.xlu1 %2865 }
 0xfa3   : > { %v2870_v54 = vmul.f32 0.032258064, %v2866_v51  ;;  %v2863_v55 = vmul.f32 %v2861_v50, %v2861_v50 }
 0xfa5   : > { %3801 = vrsqrt.f32 %v2870_v54  ;;  %v2867_v8 = vsel %vm763_vm4, %v2863_v55, 0.0  ;;  %vm2874_vm11 = vcmp.eq.f32.partialorder %v2870_v54, inf  ;;  %v2877_v60 = vand.u32 2147483648, %v2870_v54 }
 0xfa6   : > { %2868 = vadd.xlane.f32.xlu1 %v2867_v8  ;;  %vm2876_vm12 = vcmp.eq.f32.partialorder %v2870_v54, 0.0 }
 0xfaf   : > { %v3802_v57 = vpop.eup %3801 }
 0xfb0   : > { %v2873_v59 = vmul.f32 %v3802_v57, %v2870_v54 }
 0xfb2   : > { %v2875_v61 = vsel %vm2874_vm11, %v2870_v54, %v2873_v59 }
 0xfb3   : > { %v2878_v63 = vsel %vm2876_vm12, %v2877_v60, %v2875_v61 }
 0xfb4   : > { %v2886_v0 = vadd.f32 1e-06, %v2878_v63 }
 0xfb6   : > { %3803 = vrcp.f32 %v2886_v0 }
 0xfc0   : > { %v3804_v1 = vpop.eup %3803 }
 0xfc1   : > { %v2890_v3 = vmul.f32 %v3804_v1, %v2860_v43 }
 0xfc3   : > { %v2898_v5 = vmul.f32 %v3419_v2, %v2890_v3 }
 0xfc5   : > { %v2906_v62 = vadd.f32 %v3420_v4, %v2898_v5 }
 0xfc7   : > { %3647 = vmatprep.mubr.msk.f32.mxu0 %vm763_vm4, %v2906_v62 }
0x1033   : > { %v2869_v14 = vpop.xlane.xlu1 %2868 }
0x1034   : > { %v2871_v24 = vmul.f32 0.032258064, %v2869_v14 }
0x1036   : > { %3805 = vrsqrt.f32 %v2871_v24  ;;  %vm2881_vm13 = vcmp.eq.f32.partialorder %v2871_v24, inf  ;;  %v2884_v27 = vand.u32 2147483648, %v2871_v24  ;;  %vm2883_vm14 = vcmp.eq.f32.partialorder %v2871_v24, 0.0 }
0x1040   : > { %v3806_v25 = vpop.eup %3805 }
0x1041   : > { %v2880_v26 = vmul.f32 %v3806_v25, %v2871_v24 }
0x1043   : > { %v2882_v28 = vsel %vm2881_vm13, %v2871_v24, %v2880_v26 }
0x1044   : > { %v2885_v53 = vsel %vm2883_vm14, %v2884_v27, %v2882_v28 }
0x1045   : > { %v2887_v20 = vadd.f32 1e-06, %v2885_v53 }
0x1047   : > { %3807 = vrcp.f32 %v2887_v20 }
0x1051   : > { %v3808_v56 = vpop.eup %3807 }
0x1052   : > { %v2891_v30 = vmul.f32 %v3808_v56, %v2861_v50 }
0x1054   : > { %v2899_v31 = vmul.f32 %v3419_v2, %v2891_v30 }
0x1056   : > { %v2907_v32 = vadd.f32 %v3420_v4, %v2899_v31 }
0x1058   : > { %3648 = vmatmul.mubr.msk.f32.vlgmr.msra.gmra.mrb[26].mxu0 %vm763_vm4, %v2907_v32 }
0x112b   : > { %v3649_v36 = vpop.f32.mrb[26].mxu0 }
0x112c   : > { %v2997_v37 = vadd.f32 %v3649_v36, %v3421_v35  ;;  %v2991_v38 = vpop.f32.mrb[27].mxu0 }
0x112d   : > { %v2992_v39 = vadd.f32 %v3421_v35, %v2991_v38 }
0x112e   : > { %v3001_v41 = vmax.f32 %v2997_v37, 0.0 }
0x112f   : > { %v3000_v40 = vmax.f32 %v2992_v39, 0.0 }
0x1131   : > { %3666 = vmatprep.mubr.msk.f32.mxu1 %vm3017_vm15, %v3000_v40 }
0x1132   : > { %3667 = vmatmul.mubr.msk.f32.vlgmr.msra.gmra.mrb[24].mxu1 %vm3017_vm15, %v3001_v41 }
0x1205   : > { %v3668_v43 = vpop.f32.mrb[24].mxu1  ;;  %3106 = sbr.rel (%p3427_p6) target bundleno = 4952 (0x1358), region = 96 }
0x1206   : > { %v3096_v44 = vadd.f32 %v3668_v43, %v3424_v42  ;;  %v3090_v46 = vpop.f32.mrb[25].mxu1 }
0x1207   : > { %v3091_v47 = vadd.f32 %v3424_v42, %v3090_v46 }
0x1208   : > { %v3100_v22 = vadd.f32 %v3096_v44, %v4387_v45 }
0x1209   : > { %v3099_v48 = vadd.f32 %v3091_v47, %v4378_v29 }
0x120a   : > { %3102 = vst.msk [vmem:[#allocation2 + $0x8] sm:$0xff] %vm763_vm4, %v3100_v22  ;;  %v3112_v50 = vsel (!%p3427_p6), %vm763_vm4, %v3100_v22, 0.0 }
0x120b   : > { %3101 = vst.msk [vmem:[#allocation2] sm:$0xff] %vm763_vm4, %v3099_v48  ;;  %v3109_v49 = vsel (!%p3427_p6), %vm763_vm4, %v3099_v48, 0.0 }
0x120c   : > { %3110 = vadd.xlane.f32.xlu0 %v3109_v49 }
0x1210   : > { %3113 = vadd.xlane.f32.xlu0 %v3112_v50 }
0x1299   : > { %v3111_v51 = vpop.xlane.xlu0 %3110 }
0x129a   : > { %v3115_v54 = vmul.f32 0.03125, %v3111_v51 }
0x129c   : > { %v3117_v55 = vsub.f32 %v3099_v48, %v3115_v54 }
0x129d   : > { %v3114_v8 = vpop.xlane.xlu0 %3113 }
0x129e   : > { %v3116_v45 = vmul.f32 0.03125, %v3114_v8  ;;  %v3119_v57 = vmul.f32 %v3117_v55, %v3117_v55 }
0x12a0   : > { %v3118_v29 = vsub.f32 %v3100_v22, %v3116_v45  ;;  %v3121_v59 = vsel %vm763_vm4, %v3119_v57, 0.0 }
0x12a1   : > { %3122 = vadd.xlane.f32.xlu1 %v3121_v59 }
0x12a2   : > { %v3120_v60 = vmul.f32 %v3118_v29, %v3118_v29 }
0x12a4   : > { %v3124_v61 = vsel %vm763_vm4, %v3120_v60, 0.0 }
0x12a5   : > { %3125 = vadd.xlane.f32.xlu1 %v3124_v61 }
0x132e   : > { %v3123_v63 = vpop.xlane.xlu1 %3122 }
0x132f   : > { %v3127_v0 = vmul.f32 0.032258064, %v3123_v63 }
0x1331   : > { %3809 = vrsqrt.f32 %v3127_v0  ;;  %vm3131_vm0 = vcmp.eq.f32.partialorder %v3127_v0, inf  ;;  %v3134_v5 = vand.u32 2147483648, %v3127_v0  ;;  %vm3133_vm1 = vcmp.eq.f32.partialorder %v3127_v0, 0.0 }
0x1332   : > { %v3126_v1 = vpop.xlane.xlu1 %3125 }
0x1333   : > { %v3128_v2 = vmul.f32 0.032258064, %v3126_v1 }
0x1335   : > { %3811 = vrsqrt.f32 %v3128_v2  ;;  %vm3138_vm2 = vcmp.eq.f32.partialorder %v3128_v2, inf  ;;  %v3141_v10 = vand.u32 2147483648, %v3128_v2  ;;  %vm3140_vm3 = vcmp.eq.f32.partialorder %v3128_v2, 0.0 }
0x133b   : > { %v3810_v3 = vpop.eup %3809 }
0x133c   : > { %v3130_v4 = vmul.f32 %v3810_v3, %v3127_v0 }
0x133e   : > { %v3132_v62 = vsel %vm3131_vm0, %v3127_v0, %v3130_v4 }
0x133f   : > { %v3812_v52 = vpop.eup %3811  ;;  %v3135_v6 = vsel %vm3133_vm1, %v3134_v5, %v3132_v62 }
0x1340   : > { %v3143_v9 = vadd.f32 1e-06, %v3135_v6  ;;  %v3137_v58 = vmul.f32 %v3812_v52, %v3128_v2 }
0x1342   : > { %3813 = vrcp.f32 %v3143_v9  ;;  %v3139_v11 = vsel %vm3138_vm2, %v3128_v2, %v3137_v58 }
0x1343   : > { %v3142_v12 = vsel %vm3140_vm3, %v3141_v10, %v3139_v11 }
0x1344   : > { %v3144_v13 = vadd.f32 1e-06, %v3142_v12 }
0x1346   : > { %3815 = vrcp.f32 %v3144_v13 }
0x134c   : > { %v3814_v15 = vpop.eup %3813 }
0x134d   : > { %v3147_v17 = vmul.f32 %v3814_v15, %v3117_v55 }
0x134f   : > { %v3155_v19 = vmul.f32 %v3428_v16, %v3147_v17 }
0x1350   : > { %v3816_v21 = vpop.eup %3815 }
0x1351   : > { %v3163_v23 = vadd.f32 %v3429_v18, %v3155_v19  ;;  %v3148_v14 = vmul.f32 %v3816_v21, %v3118_v29 }
0x1353   : > { %3165 = vst.msk [vmem:[#allocation7] sm:$0xff] %vm763_vm4, %v3163_v23  ;;  %v3156_v24 = vmul.f32 %v3428_v16, %v3148_v14 }
0x1355   : > { %v3164_v25 = vadd.f32 %v3429_v18, %v3156_v24 }
0x1357   : > { %3166 = vst.msk [vmem:[#allocation7 + $0x8] sm:$0xff] %vm763_vm4, %v3164_v25 }
0x1358 PF: > { %s4534_s19 = sld [smem:[#allocation11_spill]]  ;;  %s3920_s0 = smov [#allocation7]  }
0x1359   : > { %s3176_s23 = sshll.u32 %s3920_s0, 4  ;;  %s3177_s23 = int_to_ptr.vmem [resolvable:$true] %s3176_s23 }
0x135a   : > { %s3845_s20 = scalar_lea.vmem %s3177_s23, 256  ;;  %p3852_p13 = scmp.lt.s32.totalorder %s3177_s23, %s3177_s23 }
0x135b   : > { %p3846_p10 = scmp.ne.s32.totalorder %s3177_s23, %s3845_s20  ;;  %p3853_p0 = scmp.lt.s32.totalorder %s3845_s20, %s3845_s20 }
0x135d   : > { %p3854_p1 = por %p3853_p0, %p3852_p13 }
0x135e   : > { %s4535_s29 = sadd.s32 4294967295, %s4534_s19  }
0x135f   : > { %p4447_p8 = scmp.eq.s32.totalorder %s4535_s29, 1 }
0x1361   : > { %p3847_p11 = pnand %p3846_p10, %p4447_p8 }
0x1363   : > { %p3848_p12 = pneg %p3847_p11 }
0x1365   : > { %p3855_p2 = pnand %p3854_p1, %p3848_p12 }
0x1367   : > { %3858 = shalt.err (!%p3855_p2)
}
0x1368   : > { %s4537_s16 = sld [smem:[#allocation19_spill]] }
0x136e   : > { %s3859_s18 = scalar_lea.hbm %s4537_s16, 256 }
0x136f   : > { %p3860_p5 = scmp.ne.s32.totalorder %s4537_s16, %s3859_s18  ;;  %p3865_p3 = scmp.lt.u32.totalorder %s3859_s18, %s4537_s16 }
0x1371   : > { %p3861_p7 = pnand %p3860_p5, %p4447_p8 }
0x1373   : > { %p3862_p9 = pneg %p3861_p7 }
0x1375   : > { %p3867_p4 = pnand %p3865_p3, %p3862_p9 }
0x1377   : > { %3870 = shalt.err (!%p3867_p4)
}
0x1378   : > { %s3921_s6 = smov 128   ;;  %s3922_s21 = smov 8  }
0x1379   : > { %3706 = dma.vmem_to_hbm [thread:$0]  (%p4447_p8), %s3177_s23, 256, %s4537_s16, [#allocation6], %s3921_s6, %s3921_s6, %s3922_s21  }
0x137a   : > { %3888 = dma.done.wait (%p4447_p8), [#allocation6], 256  }
0x137b   : > { %3890 = vsyncadd (%p4447_p8), [#allocation6], 4294967040 }
0x137c PF: > { %s4538_s24 = sld [smem:[#allocation11_spill]]  ;;  %s4539_s21 = sld [smem:[#allocation10_spill]] }
0x137d   : > { %s4540_s22 = sld [smem:[#allocation12_spill]] }
0x1382   : > { %s28_s23 = sadd.s32 1, %s4538_s24  }
0x1383   : > { %p25_p6 = scmp.ge.s32.totalorder %s28_s23, 4  }
0x1385   :  { %27 = sbr.rel (!%p25_p6) target bundleno = 10 (0xa), region = 163 }
0x138c   :  { %3192 = vsyncpa [#allocation5], 1 }
0x138d   :  { %3194 = vsyncpa [#allocation5 + $0x1], 1 }
0x138e   :  { %3195 = vsyncpa [#allocation6], 1 }
0x138f   :  { %3197 = vsyncpa [#allocation6 + $0x1], 1 }

</bundles_post_ra>
